<compile_context>
chip_gen: v6e
topology: v6e:2x2x1
jax: 0.10.0
libtpu: 0.0.40
codegen_flags: <defaults>
</compile_context>

<pallas_src>
import functools

import jax
import jax.numpy as jnp
from jax.experimental import pallas as pl
from jax.experimental.pallas import tpu as pltpu


def _round_up(x: int, m: int) -> int:
    return (x + m - 1) // m * m


def ffn_kernel(u_ref, h_ref, w1_ref, b1_ref, w2_ref, b2_ref, *rest,
               n_hid_chunks, tk_hid, has_mask):
    """One row-tile: (U @ W1 + b1) -> dropout -> (@ W2 + b2) + H."""
    if has_mask:
        mask_ref, o_ref, acc_ref = rest
    else:
        o_ref, acc_ref = rest
        mask_ref = None

    # bf16 feeds the MXU at full rate on v5e/v6e/v7x; accumulation stays f32.
    u = u_ref[...].astype(jnp.bfloat16)                       # (tm, D_in)
    acc_ref[...] = jnp.zeros(acc_ref.shape, acc_ref.dtype)    # (tm, D_out) f32

    # Tile the hidden dim: produce `mid` in (tm, tk_hid) chunks and accumulate
    # chunk @ W2[chunk] into the f32 VMEM scratch.  n_hid_chunks is static, so
    # all slice offsets are static (aligned) slices of the resident weights.
    for c in range(n_hid_chunks):
        off = c * tk_hid
        mid = jnp.dot(u, w1_ref[:, pl.ds(off, tk_hid)],
                      preferred_element_type=jnp.float32)      # (tm, tk_hid) f32
        mid = mid + b1_ref[:, pl.ds(off, tk_hid)]
        if mask_ref is not None:
            # Precomputed scaled keep-mask (0 or 1/(1-p)): a single VPU multiply.
            mid = mid * mask_ref[:, pl.ds(off, tk_hid)]
        acc_ref[...] += jnp.dot(mid.astype(jnp.bfloat16),
                                w2_ref[pl.ds(off, tk_hid), :],
                                preferred_element_type=jnp.float32)

    out = acc_ref[...] + b2_ref[...] + h_ref[...].astype(jnp.float32)
    o_ref[...] = out.astype(o_ref.dtype)


def _resident_spec(block_shape):
    """Weights/biases: same block at every grid step -> single-buffer if supported."""
    kwargs = {}
    if hasattr(pl, "Buffered"):
        kwargs["pipeline_mode"] = pl.Buffered(1)
    try:
        return pl.BlockSpec(block_shape, lambda i: (0, 0), **kwargs)
    except TypeError:  # older BlockSpec without pipeline_mode
        return pl.BlockSpec(block_shape, lambda i: (0, 0))


def ffn_forward(U, H, w1, b1, w2, b2, *, dropout_p=0.1, rng_key=None,
                tm=256, tk_hid=512):
    """Pallas TPU forward of FFN: l2(dropout(l1(U))) + H."""
    M, D_in = U.shape
    D_hid = w1.shape[1]
    D_out = w2.shape[1]
    assert H.shape == (M, D_out)

    # Row tiling (sublane axis).  Keep tm a multiple of 8 and pad M up to it so
    # the grid has >= 1 full steps; extra rows are sliced off at the end.
    tm = max(8, min(tm, _round_up(M, 8)))
    M_pad = _round_up(M, tm)
    if M_pad != M:
        U = jnp.pad(U, ((0, M_pad - M), (0, 0)))
        H = jnp.pad(H, ((0, M_pad - M), (0, 0)))

    # Hidden-dim chunking inside the kernel (falls back to one chunk if it
    # doesn't divide evenly — e.g. the small demo below).
    tk_hid = min(tk_hid, D_hid)
    if D_hid % tk_hid != 0:
        tk_hid = D_hid
    n_hid_chunks = D_hid // tk_hid

    # Dropout: training-mode F.dropout semantics — zero w.p. p, scale by 1/(1-p).
    # Mask is generated host-side so it is independent of tm and of the grid.
    # TODO(synk): on a real-TPU-only build, replace with in-kernel
    # pltpu.prng_random_bits + integer threshold to avoid the (M, D_hid) mask HBM
    # traffic (pltpu.prng_seed has no interpret/CPU lowering).
    has_mask = dropout_p is not None and float(dropout_p) > 0.0
    mask = None
    if has_mask:
        if rng_key is None:
            rng_key = jax.random.PRNGKey(0)
        keep_p = 1.0 - float(dropout_p)
        keep = jax.random.bernoulli(rng_key, keep_p, (M_pad, D_hid))
        mask = keep.astype(jnp.float32) * (1.0 / keep_p)

    # bf16 weights for the MXU; biases stay f32 (added to the f32 accumulator).
    w1_c = w1.astype(jnp.bfloat16)
    w2_c = w2.astype(jnp.bfloat16)
    b1_c = b1.reshape(1, D_hid).astype(jnp.float32)
    b2_c = b2.reshape(1, D_out).astype(jnp.float32)

    in_specs = [
        pl.BlockSpec((tm, D_in),  lambda i: (i, 0)),   # U row tile
        pl.BlockSpec((tm, D_out), lambda i: (i, 0)),   # H row tile (residual)
        _resident_spec((D_in, D_hid)),                 # W1 (resident, single-buffered)
        _resident_spec((1, D_hid)),                    # b1
        _resident_spec((D_hid, D_out)),                # W2
        _resident_spec((1, D_out)),                    # b2
    ]
    args = [U, H, w1_c, b1_c, w2_c, b2_c]
    if has_mask:
        in_specs.append(pl.BlockSpec((tm, D_hid), lambda i: (i, 0)))  # mask tile
        args.append(mask)

    itemsize = jnp.dtype(U.dtype).itemsize
    # Rough VMEM budget: resident bf16 weights + double-buffered row tiles + scratch.
    vmem_bytes = (
        (D_in * D_hid + D_hid * D_out) * 2
        + (D_hid + D_out) * 4
        + 2 * tm * (D_in + 2 * D_out) * itemsize
        + (2 * tm * D_hid * 4 if has_mask else 0)
        + tm * D_out * 4
    )
    vmem_limit = int(min(100 * 1024 * 1024, max(32 * 1024 * 1024, 2 * vmem_bytes)))

    kernel = functools.partial(ffn_kernel, n_hid_chunks=n_hid_chunks,
                               tk_hid=tk_hid, has_mask=has_mask)

    out = pl.pallas_call(
        kernel,
        out_shape=jax.ShapeDtypeStruct((M_pad, D_out), U.dtype),
        grid=(M_pad // tm,),
        in_specs=in_specs,
        out_specs=pl.BlockSpec((tm, D_out), lambda i: (i, 0)),
        scratch_shapes=[pltpu.VMEM((tm, D_out), jnp.float32)],
        compiler_params=pltpu.CompilerParams(
            dimension_semantics=("parallel",),      # rows shard across v7x's 2 TCs
            vmem_limit_bytes=vmem_limit),
    )(*args)

    return out[:M] if M_pad != M else out


def init_ffn_params(key, input_size, output_size, hidden_size):
    """Deterministic init mimicking torch.nn.Linear (uniform +/- 1/sqrt(fan_in))."""
    k1, k2, k3, k4 = jax.random.split(key, 4)
    bound1 = 1.0 / jnp.sqrt(input_size)
    bound2 = 1.0 / jnp.sqrt(hidden_size)
    w1 = jax.random.uniform(k1, (input_size, hidden_size), jnp.float32,
                            -bound1, bound1)
    b1 = jax.random.uniform(k2, (hidden_size,), jnp.float32, -bound1, bound1)
    w2 = jax.random.uniform(k3, (hidden_size, output_size), jnp.float32,
                            -bound2, bound2)
    b2 = jax.random.uniform(k4, (output_size,), jnp.float32, -bound2, bound2)
    return w1, b1, w2, b2


if __name__ == "__main__":
    # Small but lane-dense shapes (feature dims >= 128, hidden = 256 matches the
    # v6e/v7x MXU tile); M=512 with tm=256 gives a 2-step parallel grid.
    input_size, hidden_size, output_size = 128, 256, 128
    M = 512

    key = jax.random.PRNGKey(0)
    kU, kH, kP, kD = jax.random.split(key, 4)
    U = jax.random.normal(kU, (M, input_size), jnp.float32)
    H = jax.random.normal(kH, (M, output_size), jnp.float32)
    w1, b1, w2, b2 = init_ffn_params(kP, input_size, output_size, hidden_size)

    # Training-mode forward (dropout between the two layers).
    out = ffn_forward(U, H, w1, b1, w2, b2, dropout_p=0.1, rng_key=kD, tm=256)
    jax.block_until_ready(out)
    assert out.shape == (M, output_size)
    assert bool(jnp.all(jnp.isfinite(out)))

    # Sanity check against a pure-JAX reference with dropout disabled, using the
    # same bf16-inputs / f32-accumulation matmul recipe as the kernel.
    out_nodrop = ffn_forward(U, H, w1, b1, w2, b2, dropout_p=None, tm=256)
    mid_ref = jnp.dot(U.astype(jnp.bfloat16), w1.astype(jnp.bfloat16),
                      preferred_element_type=jnp.float32) + b1
    ref = jnp.dot(mid_ref.astype(jnp.bfloat16), w2.astype(jnp.bfloat16),
                  preferred_element_type=jnp.float32) + b2 + H
    assert jnp.allclose(out_nodrop, ref, atol=1e-2, rtol=1e-2), \
        float(jnp.max(jnp.abs(out_nodrop - ref)))

    print("KERNEL_OK")
</pallas_src>

<mosaic_0001>
module attributes {stable_mosaic.version = 11 : i64} {
  func.func @ffn_kernel(%arg0: i32, %arg1: memref<256x128xf32, #tpu.memory_space<vmem>>, %arg2: memref<256x128xf32, #tpu.memory_space<vmem>>, %arg3: memref<128x256xbf16, #tpu.memory_space<vmem>>, %arg4: memref<1x256xf32, #tpu.memory_space<vmem>>, %arg5: memref<256x128xbf16, #tpu.memory_space<vmem>>, %arg6: memref<1x128xf32, #tpu.memory_space<vmem>>, %arg7: memref<256x256xf32, #tpu.memory_space<vmem>>, %arg8: memref<256x128xf32, #tpu.memory_space<vmem>>, %arg9: memref<256x128xf32, #tpu.memory_space<vmem>>) attributes {dimension_semantics = [#tpu.dimension_semantics<parallel>], iteration_bounds = array<i64: 2>, scalar_prefetch = 0 : i64, scratch_operands = 1 : i64, tpu.core_type = #tpu.core_type<tc>, window_params = [{transform_indices = @transform_0, window_bounds = array<i64: 256, 128>}, {transform_indices = @transform_1, window_bounds = array<i64: 256, 128>}, {pipeline_mode = #tpu.pipeline_mode<synchronous>, transform_indices = @transform_2, window_bounds = array<i64: 128, 256>}, {pipeline_mode = #tpu.pipeline_mode<synchronous>, transform_indices = @transform_3, window_bounds = array<i64: 1, 256>}, {pipeline_mode = #tpu.pipeline_mode<synchronous>, transform_indices = @transform_4, window_bounds = array<i64: 256, 128>}, {pipeline_mode = #tpu.pipeline_mode<synchronous>, transform_indices = @transform_5, window_bounds = array<i64: 1, 128>}, {transform_indices = @transform_6, window_bounds = array<i64: 256, 256>}, {transform_indices = @transform_7, window_bounds = array<i64: 256, 128>}]} {
    %c0 = arith.constant 0 : index
    %c0_0 = arith.constant 0 : index
    %0 = vector.load %arg1[%c0, %c0_0] : memref<256x128xf32, #tpu.memory_space<vmem>>, vector<256x128xf32>
    %1 = arith.truncf %0 : vector<256x128xf32> to vector<256x128xbf16>
    %cst = arith.constant 0.000000e+00 : f32
    %2 = vector.broadcast %cst : f32 to vector<256x128xf32>
    %c0_1 = arith.constant 0 : index
    %c0_2 = arith.constant 0 : index
    %3 = vector.load %arg9[%c0_1, %c0_2] : memref<256x128xf32, #tpu.memory_space<vmem>>, vector<256x128xf32>
    tpu.vector_store %arg9[%c0_1, %c0_2], %2 {strides = array<i32>} : memref<256x128xf32, #tpu.memory_space<vmem>>, vector<256x128xf32>,
    %c0_3 = arith.constant 0 : index
    %c0_4 = arith.constant 0 : index
    %4 = vector.load %arg3[%c0_3, %c0_4] : memref<128x256xbf16, #tpu.memory_space<vmem>>, vector<128x256xbf16>
    %cst_5 = arith.constant dense<0.000000e+00> : vector<256x256xf32>
    %5 = tpu.matmul %1, %4, %cst_5 {dimension_numbers = #tpu.dot_dimension_numbers<[1], [0], [0], [1], [0, 0, 1, 1], [], []>} : vector<256x128xbf16>, vector<128x256xbf16>, vector<256x256xf32> -> vector<256x256xf32>
    %c0_6 = arith.constant 0 : index
    %c0_7 = arith.constant 0 : index
    %6 = vector.load %arg4[%c0_6, %c0_7] : memref<1x256xf32, #tpu.memory_space<vmem>>, vector<1x256xf32>
    %7 = vector.broadcast %6 : vector<1x256xf32> to vector<256x256xf32>
    %8 = arith.addf %5, %7 : vector<256x256xf32>
    %c0_8 = arith.constant 0 : index
    %c0_9 = arith.constant 0 : index
    %9 = vector.load %arg7[%c0_8, %c0_9] : memref<256x256xf32, #tpu.memory_space<vmem>>, vector<256x256xf32>
    %10 = arith.mulf %8, %9 : vector<256x256xf32>
    %c0_10 = arith.constant 0 : index
    %c0_11 = arith.constant 0 : index
    %11 = vector.load %arg9[%c0_10, %c0_11] : memref<256x128xf32, #tpu.memory_space<vmem>>, vector<256x128xf32>
    %12 = arith.truncf %10 : vector<256x256xf32> to vector<256x256xbf16>
    %c0_12 = arith.constant 0 : index
    %c0_13 = arith.constant 0 : index
    %13 = vector.load %arg5[%c0_12, %c0_13] : memref<256x128xbf16, #tpu.memory_space<vmem>>, vector<256x128xbf16>
    %cst_14 = arith.constant dense<0.000000e+00> : vector<256x128xf32>
    %14 = tpu.matmul %12, %13, %cst_14 {dimension_numbers = #tpu.dot_dimension_numbers<[1], [0], [0], [1], [0, 0, 1, 1], [], []>} : vector<256x256xbf16>, vector<256x128xbf16>, vector<256x128xf32> -> vector<256x128xf32>
    %15 = arith.addf %11, %14 : vector<256x128xf32>
    %c0_15 = arith.constant 0 : index
    %c0_16 = arith.constant 0 : index
    %16 = vector.load %arg9[%c0_15, %c0_16] : memref<256x128xf32, #tpu.memory_space<vmem>>, vector<256x128xf32>
    tpu.vector_store %arg9[%c0_15, %c0_16], %15 {strides = array<i32>} : memref<256x128xf32, #tpu.memory_space<vmem>>, vector<256x128xf32>,
    %c0_17 = arith.constant 0 : index
    %c0_18 = arith.constant 0 : index
    %17 = vector.load %arg9[%c0_17, %c0_18] : memref<256x128xf32, #tpu.memory_space<vmem>>, vector<256x128xf32>
    %c0_19 = arith.constant 0 : index
    %c0_20 = arith.constant 0 : index
    %18 = vector.load %arg6[%c0_19, %c0_20] : memref<1x128xf32, #tpu.memory_space<vmem>>, vector<1x128xf32>
    %19 = vector.broadcast %18 : vector<1x128xf32> to vector<256x128xf32>
    %20 = arith.addf %17, %19 : vector<256x128xf32>
    %c0_21 = arith.constant 0 : index
    %c0_22 = arith.constant 0 : index
    %21 = vector.load %arg2[%c0_21, %c0_22] : memref<256x128xf32, #tpu.memory_space<vmem>>, vector<256x128xf32>
    %22 = arith.addf %20, %21 : vector<256x128xf32>
    %c0_23 = arith.constant 0 : index
    %c0_24 = arith.constant 0 : index
    %23 = vector.load %arg8[%c0_23, %c0_24] : memref<256x128xf32, #tpu.memory_space<vmem>>, vector<256x128xf32>
    tpu.vector_store %arg8[%c0_23, %c0_24], %22 {strides = array<i32>} : memref<256x128xf32, #tpu.memory_space<vmem>>, vector<256x128xf32>,
    return
  }
  func.func @transform_0(%arg0: i32) -> (i32, i32) {
    %c0_i32 = arith.constant 0 : i32
    %c0_i32_0 = arith.constant 0 : i32
    return %arg0, %c0_i32 : i32, i32
  }
  func.func @transform_1(%arg0: i32) -> (i32, i32) {
    %c0_i32 = arith.constant 0 : i32
    %c0_i32_0 = arith.constant 0 : i32
    return %arg0, %c0_i32 : i32, i32
  }
  func.func @transform_2(%arg0: i32) -> (i32, i32) {
    %c0_i32 = arith.constant 0 : i32
    %c0_i32_0 = arith.constant 0 : i32
    %c0_i32_1 = arith.constant 0 : i32
    return %c0_i32, %c0_i32_0 : i32, i32
  }
  func.func @transform_3(%arg0: i32) -> (i32, i32) {
    %c0_i32 = arith.constant 0 : i32
    %c0_i32_0 = arith.constant 0 : i32
    %c0_i32_1 = arith.constant 0 : i32
    return %c0_i32, %c0_i32_0 : i32, i32
  }
  func.func @transform_4(%arg0: i32) -> (i32, i32) {
    %c0_i32 = arith.constant 0 : i32
    %c0_i32_0 = arith.constant 0 : i32
    %c0_i32_1 = arith.constant 0 : i32
    return %c0_i32, %c0_i32_0 : i32, i32
  }
  func.func @transform_5(%arg0: i32) -> (i32, i32) {
    %c0_i32 = arith.constant 0 : i32
    %c0_i32_0 = arith.constant 0 : i32
    %c0_i32_1 = arith.constant 0 : i32
    return %c0_i32, %c0_i32_0 : i32, i32
  }
  func.func @transform_6(%arg0: i32) -> (i32, i32) {
    %c0_i32 = arith.constant 0 : i32
    %c0_i32_0 = arith.constant 0 : i32
    return %arg0, %c0_i32 : i32, i32
  }
  func.func @transform_7(%arg0: i32) -> (i32, i32) {
    %c0_i32 = arith.constant 0 : i32
    %c0_i32_0 = arith.constant 0 : i32
    return %arg0, %c0_i32 : i32, i32
  }
}

</mosaic_0001>

<bundles_post_ra>
// kernel: tpu_custom_call.1
= control target key start
LH: loop header
LB: loop body
LE: loop exit
PB: predicated region body
PF: predicated region fallthrough
CT: control target
= control target key end

     0   :  { %s2815_s0 = inlined_call_operand.hbm [shape: f32[512,128], index: 0, kind: input, shape index: {}]   ;;  %s2816_s1 = inlined_call_operand.hbm [shape: f32[512,128], index: 1, kind: input, shape index: {}]   ;;  %s2817_s2 = inlined_call_operand.hbm [shape: bf16[128,256], index: 2, kind: input, shape index: {}]   ;;  %s2818_s3 = inlined_call_operand.vmem [shape: f32[1,256], index: 3, kind: input, shape index: {}]   ;;  %s2819_s4 = inlined_call_operand.hbm [shape: bf16[256,128], index: 4, kind: input, shape index: {}]   ;;  %s2820_s5 = inlined_call_operand.vmem [shape: f32[1,128], index: 5, kind: input, shape index: {}]   ;;  %s2821_s6 = inlined_call_operand.hbm [shape: f32[512,256], index: 6, kind: input, shape index: {}]   ;;  %s2822_s7 = inlined_call_operand.hbm [shape: f32[512,128], index: 7, kind: output, shape index: {}]  }
   0x1   :  { %2843 = sst [smem:[#allocation25_spill]] %s2815_s0 }
   0x2   :  { %2844 = sst [smem:[#allocation26_spill]] %s2817_s2 }
   0x3   :  { %2845 = sst [smem:[#allocation27_spill]] %s2820_s5 }
   0x4   :  { %2846 = sst [smem:[#allocation28_spill]] %s2822_s7 }
   0x5   :  { %12 = vsyncpa [#allocation4], 0 }
   0x6   :  { %14 = vsyncpa [#allocation4 + $0x1], 0 }
   0x7   :  { %15 = vsyncpa [#allocation7], 0 }
   0x8   :  { %17 = vsyncpa [#allocation7 + $0x1], 0 }
   0x9   :  { %18 = vsyncpa [#allocation10], 0 }
   0xa   :  { %19 = vsyncpa [#allocation5], 0 }
   0xb   :  { %21 = vsyncpa [#allocation5 + $0x1], 0  ;;  %s2227_s24 = smov 0   ;;  %s2229_s25 = smov 0  }
   0xc   :  { %s2231_s26 = smov 0   ;;  %s2233_s27 = smov 0  }
   0xd LB: > { %2847 = sst [smem:[#allocation19_spill]] %s2158_s24  ;;  %s2248_s28 = sadd.s32 4294967295, %s2170_s27   ;;  %s2170_s27 = sphi %s2233_s27, %s2883_s27   ;;  %s2166_s26 = sphi %s2231_s26, %s2885_s26   ;;  %s2162_s25 = sphi %s2229_s25, %s2887_s25   ;;  %s2158_s24 = sphi %s2227_s24, %s2886_s24  }
   0xe   : > { %2848 = sst [smem:[#allocation20_spill]] %s2166_s26  ;;  %s1651_s29 = sadd.s32 4294967294, %s2170_s27  }
   0xf   : > { %p47_p0 = scmp.ne.s32.totalorder %s2162_s25, %s2158_s24  ;;  %p2830_p1 = scmp.eq.s32.totalorder %s2248_s28, 0 }
  0x10   : > { %p207_p2 = scmp.eq.s32.totalorder %s2248_s28, 1  ;;  %p213_p3 = scmp.eq.s32.totalorder %s1651_s29, 1 }
  0x11   : > { %p2257_p4 = por %p2830_p1, %p47_p0  ;;  %p1652_p5 = scmp.ge.s32.totalorder %s2170_s27, 1 }
  0x12   : > { %p2262_p6 = por %p213_p3, %p47_p0  ;;  %p220_p7 = scmp.lt.s32.totalorder %s2170_s27, 3 }
  0x13   : > { %s2849_s30 = scalar_select %p2257_p4, 1, 0 }
  0x14   : > { %s2850_s8 = scalar_select %p2262_p6, 1, 0 }
  0x15   : > { %p2267_p8 = pnand %p1652_p5, %p220_p7  ;;  %s2172_s10 = smov [#allocation8]  }
  0x16   : > { %2851 = sst [smem:[#allocation21_spill]] %s2850_s8  ;;  %s232_s11 = sshll.u32 %s2172_s10, 4  ;;  %s233_s11 = int_to_ptr.vmem [resolvable:$true] %s232_s11 }
  0x17   : > { %s2852_s9 = scalar_select %p2267_p8, 1, 0 }
  0x18   : > { %p1844_p9 = pneg %p2267_p8  ;;  %s2281_s13 = sadd.s32 1, %s2170_s27  }
  0x19   : > { %2854 = sst [smem:[#allocation22_spill]] %s2281_s13  ;;  %s34_s14 = sadd.s32 1, %s2166_s26 }
  0x1a   : > { %p2276_p11 = pnand %p1844_p9, %p2830_p1  ;;  %s31_s15 = ssub.s32 %s2170_s27, %s2281_s13 }
  0x1b   : > { %s1965_s16 = scalar_lea.vmem %s233_s11, 2048  ;;  %p1973_p5 = scmp.lt.s32.totalorder %s233_s11, %s233_s11 }
  0x1c   : > { %s2853_s12 = scalar_select %p2276_p11, 1, 0 }
  0x1d   : > { %p2831_p12 = pneg %p2276_p11  ;;  %p1966_p13 = scmp.ne.s32.totalorder %s233_s11, %s1965_s16 }
  0x1e   : > { %p1974_p7 = scmp.lt.s32.totalorder %s1965_s16, %s1965_s16 }
  0x1f   : > { %p1968_p0 = pnand %p1966_p13, %p2831_p12 }
  0x20   : > { %p1975_p9 = por %p1974_p7, %p1973_p5 }
  0x21   : > { %p1969_p3 = pneg %p1968_p0 }
  0x23   : > { %p1976_p10 = pnand %p1975_p9, %p1969_p3 }
  0x25   : > { %1979 = shalt.err (!%p1976_p10)
}
  0x26   : > { %s2823_s17 = smov 128   ;;  %s2826_s18 = smov 8  }
  0x27   : > { %s2855_s2 = sld [smem:[#allocation26_spill]]  ;;  %p32_p10 = scmp.eq.s32.totalorder %s31_s15, 0 }
  0x28   : > { %p41_p13 = scmp.ne.s32.totalorder %s2166_s26, %s2162_s25  ;;  %p42_p0 = scmp.eq.s32.totalorder %s2170_s27, 0 }
  0x29   : > { %p1867_p3 = scmp.lt.s32.totalorder %s2170_s27, 2  ;;  %s2825_s29 = sand.u32 1, %s2166_s26  }
  0x2a   : > { %s2304_s21 = scalar_select %p32_p10, %s2166_s26, %s34_s14  }
  0x2b   : > { %p43_p5 = por %p42_p0, %p41_p13  ;;  %p2308_p7 = por %p207_p2, %p41_p13 }
  0x2c   : > { %2856 = sst [smem:[#allocation23_spill]] %s2304_s21  ;;  %s2316_s10 = sshll.u32 %s2825_s29, 8 }
  0x2d   : > { %1847 = dma.hbm_to_vmem [thread:$0]  (!%p2276_p11), %s2855_s2, 2048, %s233_s11, [#allocation7], %s2823_s17, %s2823_s17, %s2826_s18  }
  0x2e   : > { %s2857_s22 = scalar_select %p2308_p7, 1, 0 }
  0x2f   : > { %s1711_s11 = sshll.u32 %s2170_s27, 12  ;;  %s2859_s0 = sld [smem:[#allocation25_spill]] }
  0x30   : > { %2858 = sst [smem:[#allocation24_spill]] %s2857_s22  ;;  %s269_s14 = scalar_lea.vmem [#allocation3], %s2316_s10 }
  0x31   : > { %s276_s20 = sshll.u32 %s269_s14, 4  ;;  %p2327_p2 = pnand %p1867_p3, %p43_p5  ;;  %s2325_s20 = int_to_ptr.vmem [resolvable:$true] %s276_s20 }
  0x32   : > { %s2334_s23 = scalar_lea.hbm %s2816_s1, %s1711_s11  ;;  %s2861_s15 = sand.u32 1, %s2170_s27  }
  0x33   : > { %s2338_s16 = scalar_lea.sflag [#allocation4], %s2861_s15  ;;  %p2344_p10 = pneg %p2327_p2 }
  0x35   : > { %s2322_s19 = scalar_lea.hbm %s2859_s0, %s1711_s11  ;;  %s1985_s18 = scalar_lea.hbm %s2859_s0, 8192 }
  0x36   : > { %s1980_s2 = scalar_lea.hbm %s2322_s19, 4096  ;;  %p1986_p3 = scmp.lt.s32.totalorder %s2322_s19, %s2859_s0 }
  0x37   : > { %p1981_p9 = scmp.ne.s32.totalorder %s2322_s19, %s1980_s2  ;;  %p1987_p5 = scmp.lt.s32.totalorder %s1985_s18, %s1980_s2 }
  0x39   : > { %p1983_p13 = pnand %p2344_p10, %p1981_p9  ;;  %p1988_p1 = por %p1987_p5, %p1986_p3 }
  0x3b   : > { %p1984_p0 = pneg %p1983_p13 }
  0x3d   : > { %p1989_p12 = pnand %p1988_p1, %p1984_p0 }
  0x3f   : > { %1992 = shalt.err (!%p1989_p12)
}
  0x40   : > { %s1993_s15 = scalar_lea.vmem %s2325_s20, 4096  ;;  %s2175_s8 = smov [#allocation3]  }
  0x41   : > { %p1994_p6 = scmp.ne.s32.totalorder %s2325_s20, %s1993_s15  ;;  %s1998_s13 = sshll.u32 %s2175_s8, 4  ;;  %s1999_s13 = int_to_ptr.vmem [resolvable:$false] %s1998_s13 }
  0x42   : > { %s2000_s21 = scalar_lea.vmem %s1999_s13, 8192  ;;  %p2001_p7 = scmp.lt.s32.totalorder %s2325_s20, %s1999_s13 }
  0x43   : > { %p1996_p9 = pnand %p1994_p6, %p2344_p10  ;;  %p2002_p4 = scmp.lt.s32.totalorder %s2000_s21, %s1993_s15 }
  0x45   : > { %p1997_p13 = pneg %p1996_p9  ;;  %p2003_p8 = por %p2002_p4, %p2001_p7 }
  0x47   : > { %p2004_p11 = pnand %p2003_p8, %p1997_p13 }
  0x49   : > { %2007 = shalt.err (!%p2004_p11)
}
  0x4a   : > { %s2863_s2 = smov 8   ;;  %s2864_s18 = smov 128  }
  0x4b   : > { %1854 = dma.hbm_to_vmem [thread:$0]  (!%p2327_p2), %s2322_s19, 4096, %s2325_s20, %s2338_s16, %s2864_s18, %s2864_s18, %s2863_s2  }
  0x4c   : > { %s290_s8 = scalar_lea.vmem [#allocation6], %s2316_s10  ;;  %s2865_s11 = sand.u32 1, %s2166_s26  }
  0x4d   : > { %s297_s29 = sshll.u32 %s290_s8, 4  ;;  %s2373_s13 = sshll.u32 %s2865_s11, 9  ;;  %s2375_s29 = int_to_ptr.vmem [resolvable:$true] %s297_s29 }
  0x4e   : > { %s2176_s15 = smov [#allocation9]   ;;  %p2866_p4 = scmp.ne.s32.totalorder %s2853_s12, 0 }
  0x4f   : > { %s248_s21 = sshll.u32 %s2176_s15, 4  ;;  %s249_s21 = int_to_ptr.vmem [resolvable:$true] %s248_s21 }
  0x50   : > { %s2019_s0 = scalar_lea.vmem %s249_s21, 2048  ;;  %p2867_p6 = pneg %p2866_p4 }
  0x51   : > { %p2020_p1 = scmp.ne.s32.totalorder %s249_s21, %s2019_s0  ;;  %p2027_p12 = scmp.lt.s32.totalorder %s249_s21, %s249_s21 }
  0x52   : > { %p2028_p7 = scmp.lt.s32.totalorder %s2019_s0, %s2019_s0 }
  0x53   : > { %p2022_p8 = pnand %p2020_p1, %p2867_p6 }
  0x54   : > { %p2029_p0 = por %p2028_p7, %p2027_p12 }
  0x55   : > { %p2023_p11 = pneg %p2022_p8 }
  0x57   : > { %p2030_p3 = pnand %p2029_p0, %p2023_p11 }
  0x59   : > { %2033 = shalt.err (!%p2030_p3)
}
  0x5a   : > { %s2177_s10 = smov 64   ;;  %s2178_s19 = smov 4  }
  0x5b   : > { %1850 = dma.hbm_to_vmem [thread:$0]  (!%p2866_p4), %s2819_s4, 2048, %s249_s21, [#allocation10], %s2177_s10, %s2177_s10, %s2178_s19  }
  0x5c   : > { %s2868_s11 = sand.u32 1, %s2170_s27   ;;  %s2034_s26 = scalar_lea.hbm %s2334_s23, 4096 }
  0x5d   : > { %s287_s15 = scalar_lea.sflag [#allocation7], %s2868_s11  ;;  %p2035_p5 = scmp.ne.s32.totalorder %s2334_s23, %s2034_s26 }
  0x5e   : > { %s2039_s7 = scalar_lea.hbm %s2816_s1, 8192  ;;  %p2040_p1 = scmp.lt.s32.totalorder %s2334_s23, %s2816_s1 }
  0x5f   : > { %p2037_p9 = pnand %p2035_p5, %p2344_p10  ;;  %p2041_p6 = scmp.lt.s32.totalorder %s2039_s7, %s2034_s26 }
  0x61   : > { %p2038_p13 = pneg %p2037_p9  ;;  %p2042_p8 = por %p2041_p6, %p2040_p1 }
  0x63   : > { %p2043_p11 = pnand %p2042_p8, %p2038_p13 }
  0x65   : > { %2046 = shalt.err (!%p2043_p11)
}
  0x66   : > { %s2047_s12 = scalar_lea.vmem %s2375_s29, 4096  ;;  %s2179_s21 = smov [#allocation6]  }
  0x67   : > { %p2048_p4 = scmp.ne.s32.totalorder %s2375_s29, %s2047_s12  ;;  %s2052_s24 = sshll.u32 %s2179_s21, 4  ;;  %s2053_s24 = int_to_ptr.vmem [resolvable:$false] %s2052_s24 }
  0x68   : > { %s2054_s10 = scalar_lea.vmem %s2053_s24, 8192  ;;  %p2055_p0 = scmp.lt.s32.totalorder %s2375_s29, %s2053_s24 }
  0x69   : > { %p2050_p12 = pnand %p2048_p4, %p2344_p10  ;;  %p2056_p3 = scmp.lt.s32.totalorder %s2054_s10, %s2047_s12 }
  0x6b   : > { %p2051_p7 = pneg %p2050_p12  ;;  %p2057_p5 = por %p2056_p3, %p2055_p0 }
  0x6d   : > { %p2058_p9 = pnand %p2057_p5, %p2051_p7 }
  0x6f   : > { %2061 = shalt.err (!%p2058_p9)
}
  0x70   : > { %1857 = dma.hbm_to_vmem [thread:$0]  (!%p2327_p2), %s2334_s23, 4096, %s2375_s29, %s287_s15, %s2864_s18, %s2864_s18, %s2863_s2  }
  0x71   : > { %s1714_s5 = sshll.u32 %s2170_s27, 13  ;;  %s311_s19 = scalar_lea.vmem [#allocation11], %s2373_s13 }
  0x72   : > { %s2414_s22 = scalar_lea.hbm %s2821_s6, %s1714_s5  ;;  %s319_s20 = sshll.u32 %s311_s19, 4  ;;  %s2417_s20 = int_to_ptr.vmem [resolvable:$true] %s319_s20 }
  0x73   : > { %s2062_s8 = scalar_lea.hbm %s2414_s22, 8192  ;;  %s2067_s2 = scalar_lea.hbm %s2821_s6, 16384 }
  0x74   : > { %p2063_p13 = scmp.ne.s32.totalorder %s2414_s22, %s2062_s8  ;;  %p2068_p8 = scmp.lt.s32.totalorder %s2414_s22, %s2821_s6 }
  0x75   : > { %p2069_p11 = scmp.lt.s32.totalorder %s2067_s2, %s2062_s8 }
  0x76   : > { %p2065_p1 = pnand %p2063_p13, %p2344_p10 }
  0x77   : > { %p2070_p4 = por %p2069_p11, %p2068_p8 }
  0x78   : > { %p2066_p6 = pneg %p2065_p1 }
  0x7a   : > { %p2071_p12 = pnand %p2070_p4, %p2066_p6 }
  0x7c   : > { %2074 = shalt.err (!%p2071_p12)
}
  0x7d   : > { %s2075_s13 = scalar_lea.vmem %s2417_s20, 8192  ;;  %s2180_s15 = smov [#allocation11]  }
  0x7e   : > { %p2076_p7 = scmp.ne.s32.totalorder %s2417_s20, %s2075_s13  ;;  %s2080_s0 = sshll.u32 %s2180_s15, 4  ;;  %s2081_s0 = int_to_ptr.vmem [resolvable:$false] %s2080_s0 }
  0x7f   : > { %s2082_s12 = scalar_lea.vmem %s2081_s0, 16384  ;;  %p2083_p5 = scmp.lt.s32.totalorder %s2417_s20, %s2081_s0 }
  0x80   : > { %p2078_p0 = pnand %p2076_p7, %p2344_p10  ;;  %p2084_p9 = scmp.lt.s32.totalorder %s2082_s12, %s2075_s13 }
  0x82   : > { %p2079_p3 = pneg %p2078_p0  ;;  %p2085_p13 = por %p2084_p9, %p2083_p5 }
  0x84   : > { %p2086_p1 = pnand %p2085_p13, %p2079_p3 }
  0x86   : > { %2089 = shalt.err (!%p2086_p1)
}
  0x87   : > { %s2181_s21 = smov 256   ;;  %s2182_s24 = smov 16  }
  0x88   : > { %1860 = dma.hbm_to_vmem [thread:$0]  (!%p2327_p2), %s2414_s22, 8192, %s2417_s20, %s2338_s16, %s2181_s21, %s2181_s21, %s2182_s24  }
  0x89   : > { %p2869_p10 = scmp.ne.s32.totalorder %s2852_s9, 0 }
  0x8a   : > { %s333_s14 = sand.u32 (!%p2869_p10), 1, %s2248_s28   ;;  %s2444_s10 = sand.u32 (!%p2869_p10), 1, %s2162_s25  }
  0x8b   : > { %331 = sbr.rel (%p2869_p10) target bundleno = 734 (0x2de), region = 48  ;;  %s2447_s5 = sshll.u32 (!%p2869_p10), %s2444_s10, 8 }
  0x8c   : > { %s334_s7 = scalar_lea.sflag (!%p2869_p10), [#allocation4], %s333_s14  ;;  %s2450_s26 = scalar_lea.vmem (!%p2869_p10), [#allocation3], %s2447_s5 }
  0x8d   : > { %p2870_p6 = scmp.ne.s32.totalorder (!%p2869_p10), %s2849_s30, 0 }
  0x90   : > { %2133 = dma.done.wait (%p2870_p6), %s334_s7, 4096  }
  0x91   : > { %2135 = vsyncadd (%p2870_p6), %s334_s7, 4294963200  ;;  %s343_s9 = scalar_lea.sflag [#allocation7], %s333_s14  ;;  %s2457_s17 = scalar_lea.vmem [#allocation6], %s2447_s5 }
  0x92   : > { %2137 = dma.done.wait (%p2870_p6), %s343_s9, 4096  }
  0x93   : > { %2139 = vsyncadd (%p2870_p6), %s343_s9, 4294963200  ;;  %p2871_p2 = scmp.eq.s32.totalorder %s2248_s28, 0 }
  0x95   : > { %2141 = dma.done.wait (%p2871_p2), [#allocation7], 2048   ;;  %p2872_p8 = pmov %p2871_p2 }
  0x96   : > { %p2873_p11 = pmov %p2871_p2 }
  0x97   : > { %2143 = vsyncadd (%p2872_p8), [#allocation7], 4294965248 }
  0x98   : > { %2145 = dma.done.wait (%p2873_p11), [#allocation10], 2048   ;;  %p2874_p4 = pmov %p2871_p2 }
  0x99   : > { %s1671_s16 = sshll.u32 %s2444_s10, 9 }
  0x9a   : > { %2147 = vsyncadd (%p2874_p4), [#allocation10], 4294965248  ;;  %s2472_s22 = scalar_lea.vmem [#allocation11], %s1671_s16 }
  0x9b   : > { %2149 = dma.done.wait (%p2870_p6), %s334_s7, 8192  }
  0x9c   : > { %2151 = vsyncadd (%p2870_p6), %s334_s7, 4294959104  ;;  %v2183_v0 = vmov 0   ;;  %v1914_v1 = vld [vmem:[#allocation8 + $0x74] ss:$8 sps:$4 sm:$0xff]   ;;  %v1916_v2 = vld [vmem:[#allocation8 + $0x70] ss:$8 sps:$4 sm:$0xff]  }
  0x9d   : > { %629 = vmatprep.mubr.bf16.mxu0 %v2183_v0  ;;  %597 = vmatprep.subr.bf16.mxu0 %v1914_v1  ;;  %v1917_v3 = vld [vmem:[#allocation8 + $0x64] ss:$8 sps:$4 sm:$0xff]   ;;  %v1919_v4 = vld [vmem:[#allocation8 + $0x60] ss:$8 sps:$4 sm:$0xff]   ;;  %v1920_v5 = vld [vmem:[#allocation8 + $0x54] ss:$8 sps:$4 sm:$0xff]  }
  0x9e   : > { %598 = vmatpush1.bf16.msra.mxu0 %v1916_v2  ;;  %v1922_v6 = vld [vmem:[#allocation8 + $0x50] ss:$8 sps:$4 sm:$0xff]   ;;  %v1923_v7 = vld [vmem:[#allocation8 + $0x44] ss:$8 sps:$4 sm:$0xff]   ;;  %v1925_v8 = vld [vmem:[#allocation8 + $0x40] ss:$8 sps:$4 sm:$0xff]  }
  0x9f   : > { %599 = vmatprep.subr.bf16.mxu0 %v1917_v3  ;;  %v1926_v9 = vld [vmem:[#allocation8 + $0x34] ss:$8 sps:$4 sm:$0xff]   ;;  %v1928_v10 = vld [vmem:[#allocation8 + $0x30] ss:$8 sps:$4 sm:$0xff]   ;;  %v1929_v11 = vld [vmem:[#allocation8 + $0x24] ss:$8 sps:$4 sm:$0xff]  }
  0xa0   : > { %v1931_v12 = vld [vmem:[#allocation8 + $0x20] ss:$8 sps:$4 sm:$0xff]   ;;  %v1932_v13 = vld [vmem:[#allocation8 + $0x14] ss:$8 sps:$4 sm:$0xff]   ;;  %v1934_v14 = vld [vmem:[#allocation8 + $0x10] ss:$8 sps:$4 sm:$0xff]  }
  0xa1   : > { %v1935_v15 = vld [vmem:[#allocation8 + $0x4] ss:$8 sps:$4 sm:$0xff]   ;;  %v1938_v16 = vld [vmem:[#allocation9 + $0x78] sm:$0xff]   ;;  %v1940_v18 = vld [vmem:[#allocation9 + $0x70] sm:$0xff]   ;;  %s2875_s11 = sld [smem:[#allocation27_spill]]  ;;  %s2670_s23 = scalar_lea.vmem [#allocation12], %s2447_s5 }
  0xa2   : > { %600 = vmatpush1.bf16.msra.mxu0 %v1919_v4  ;;  %v1939_v17 = vld [vmem:[#allocation9 + $0x38] sm:$0xff]   ;;  %v1937_v19 = vld [vmem:[#allocation8] ss:$8 sps:$4 sm:$0xff]   ;;  %1716 = vmatprep.subr.bf16.mxu1 %v1938_v16  ;;  %v1941_v22 = vld [vmem:[#allocation9 + $0x30] sm:$0xff]   ;;  %s2876_s2 = sld [smem:[#allocation24_spill]]  ;;  %s1715_s18 = sshll.u32 %s2248_s28, 12 }
  0xa3   : > { %601 = vmatprep.subr.bf16.mxu0 %v1920_v5  ;;  %v409_v20 = vld [vmem:[%s2450_s26] sm:$0xff]  ;;  %v410_v21 = vld [vmem:[%s2450_s26 + $0x8] sm:$0xff]  ;;  %1717 = vmatpush3.bf16.msra.mxu1 %v1939_v17  ;;  %v411_v27 = vld [vmem:[%s2450_s26 + $0x10] sm:$0xff]  ;;  %s1516_s29 = sshll.u32 %s2670_s23, 4  ;;  %s2877_s0 = sld [smem:[#allocation28_spill]]  ;;  %s2771_s29 = int_to_ptr.vmem [resolvable:$true] %s1516_s29 }
  0xa4   : > { %v441_v23 = vpack.c.bf16 %v410_v21, %v409_v20  ;;  %1718 = vmatprep.subr.bf16.mxu1 %v1940_v18  ;;  %v1942_v24 = vld [vmem:[#allocation9 + $0x68] sm:$0xff]   ;;  %v1944_v26 = vld [vmem:[#allocation9 + $0x60] sm:$0xff]   ;;  %v412_v28 = vld [vmem:[%s2450_s26 + $0x18] sm:$0xff]  ;;  %v507_v18 = vlaneseq  ;;  %s1503_s21 = scalar_lea.sflag [#allocation5], %s2444_s10  ;;  %s2090_s24 = scalar_lea.vmem %s2771_s29, 4096 }
  0xa5   : > { %v1943_v25 = vld [vmem:[#allocation9 + $0x28] sm:$0xff]   ;;  %v1945_v29 = vld [vmem:[#allocation9 + $0x20] sm:$0xff]   ;;  %v442_v30 = vpack.c.bf16 %v412_v28, %v411_v27  ;;  %v1946_v31 = vld [vmem:[#allocation9 + $0x58] sm:$0xff]   ;;  %p2091_p12 = scmp.ne.s32.totalorder %s2771_s29, %s2090_s24  ;;  %s2184_s28 = smov [#allocation12]  }
  0xa6   : > { %602 = vmatpush1.bf16.msra.mxu0 %v1922_v6  ;;  %v1947_v32 = vld [vmem:[#allocation9 + $0x18] sm:$0xff]   ;;  %v413_v33 = vld [vmem:[%s2450_s26 + $0x20] sm:$0xff]  ;;  %v414_v34 = vld [vmem:[%s2450_s26 + $0x28] sm:$0xff]  ;;  %s2094_s14 = sshll.u32 %s2184_s28, 4  ;;  %s2095_s14 = int_to_ptr.vmem [resolvable:$false] %s2094_s14 }
  0xa7   : > { %603 = vmatprep.subr.bf16.mxu0 %v1923_v7  ;;  %1719 = vmatpush3.bf16.msra.mxu1 %v1941_v22  ;;  %v443_v35 = vpack.c.bf16 %v414_v34, %v413_v33  ;;  %v415_v36 = vld [vmem:[%s2450_s26 + $0x30] sm:$0xff]  ;;  %v416_v37 = vld [vmem:[%s2450_s26 + $0x38] sm:$0xff]  ;;  %v417_v39 = vld [vmem:[%s2450_s26 + $0x40] sm:$0xff]  ;;  %s2096_s5 = scalar_lea.vmem %s2095_s14, 8192  ;;  %p2097_p5 = scmp.lt.s32.totalorder %s2771_s29, %s2095_s14 }
  0xa8   : > { %1720 = vmatprep.subr.bf16.mxu1 %v1942_v24  ;;  %v444_v38 = vpack.c.bf16 %v416_v37, %v415_v36  ;;  %v418_v40 = vld [vmem:[%s2450_s26 + $0x48] sm:$0xff]  ;;  %v419_v42 = vld [vmem:[%s2450_s26 + $0x50] sm:$0xff]  ;;  %v420_v43 = vld [vmem:[%s2450_s26 + $0x58] sm:$0xff]  ;;  %p2878_p7 = scmp.ne.s32.totalorder %s2876_s2, 0  ;;  %p2098_p9 = scmp.lt.s32.totalorder %s2096_s5, %s2090_s24 }
  0xa9   : > { %v445_v41 = vpack.c.bf16 %v418_v40, %v417_v39  ;;  %v446_v44 = vpack.c.bf16 %v420_v43, %v419_v42  ;;  %v421_v45 = vld [vmem:[%s2450_s26 + $0x60] sm:$0xff]  ;;  %v422_v46 = vld [vmem:[%s2450_s26 + $0x68] sm:$0xff]  ;;  %v423_v48 = vld [vmem:[%s2450_s26 + $0x70] sm:$0xff]  ;;  %s2769_s12 = scalar_lea.hbm %s2877_s0, %s1715_s18 }
  0xaa   : > { %604 = vmatpush1.bf16.msra.mxu0 %v1925_v8  ;;  %v447_v47 = vpack.c.bf16 %v422_v46, %v421_v45  ;;  %v424_v49 = vld [vmem:[%s2450_s26 + $0x78] sm:$0xff]  ;;  %v425_v51 = vld [vmem:[%s2450_s26 + $0x80] sm:$0xff]  ;;  %v426_v52 = vld [vmem:[%s2450_s26 + $0x88] sm:$0xff]  ;;  %p2092_p0 = pnand %p2091_p12, %p2878_p7  ;;  %p2099_p13 = por %p2098_p9, %p2097_p5 }
  0xab   : > { %605 = vmatprep.subr.bf16.mxu0 %v1926_v9  ;;  %1721 = vmatpush3.bf16.msra.mxu1 %v1943_v25  ;;  %v448_v50 = vpack.c.bf16 %v424_v49, %v423_v48  ;;  %v449_v53 = vpack.c.bf16 %v426_v52, %v425_v51  ;;  %v1948_v54 = vld [vmem:[#allocation9 + $0x50] sm:$0xff]   ;;  %v428_v56 = vld [vmem:[%s2450_s26 + $0x98] sm:$0xff]  ;;  %v1950_v59 = vld [vmem:[#allocation9 + $0x48] sm:$0xff]  }
  0xac   : > { %1722 = vmatprep.subr.bf16.mxu1 %v1944_v26  ;;  %v427_v55 = vld [vmem:[%s2450_s26 + $0x90] sm:$0xff]  ;;  %v1951_v60 = vld [vmem:[#allocation9 + $0x8] sm:$0xff]   ;;  %v1952_v61 = vld [vmem:[#allocation9 + $0x40] sm:$0xff]   ;;  %p2093_p3 = pneg %p2092_p0 }
  0xad   : > { %v1949_v57 = vld [vmem:[#allocation9 + $0x10] sm:$0xff]   ;;  %v450_v58 = vpack.c.bf16 %v428_v56, %v427_v55  ;;  %v429_v62 = vld [vmem:[%s2450_s26 + $0xa0] sm:$0xff]  ;;  %v430_v63 = vld [vmem:[%s2450_s26 + $0xa8] sm:$0xff] }
  0xae   : > { %606 = vmatpush1.bf16.msra.mxu0 %v1928_v10  ;;  %v1953_v1 = vld [vmem:[#allocation9] sm:$0xff]   ;;  %v451_v2 = vpack.c.bf16 %v430_v63, %v429_v62  ;;  %v431_v3 = vld [vmem:[%s2450_s26 + $0xb0] sm:$0xff]  ;;  %v432_v4 = vld [vmem:[%s2450_s26 + $0xb8] sm:$0xff]  ;;  %p2100_p1 = pnand %p2099_p13, %p2093_p3 }
  0xaf   : > { %607 = vmatprep.subr.bf16.mxu0 %v1929_v11  ;;  %1723 = vmatpush3.bf16.msra.mxu1 %v1945_v29  ;;  %v452_v5 = vpack.c.bf16 %v432_v4, %v431_v3  ;;  %v433_v6 = vld [vmem:[%s2450_s26 + $0xc0] sm:$0xff]  ;;  %v434_v7 = vld [vmem:[%s2450_s26 + $0xc8] sm:$0xff]  ;;  %v435_v9 = vld [vmem:[%s2450_s26 + $0xd0] sm:$0xff] }
  0xb0   : > { %1724 = vmatprep.subr.bf16.mxu1 %v1946_v31  ;;  %v453_v8 = vpack.c.bf16 %v434_v7, %v433_v6  ;;  %v436_v10 = vld [vmem:[%s2450_s26 + $0xd8] sm:$0xff]  ;;  %v505_v22 = vld [vmem:[%s2818_s3] sm:$0x3]  ;;  %v792_v29 = vld [vmem:[%s2472_s22 + $0x10] sm:$0xff] }
  0xb1   : > { %v454_v11 = vpack.c.bf16 %v436_v10, %v435_v9  ;;  %v440_v16 = vld [vmem:[%s2450_s26 + $0xf8] sm:$0xff]  ;;  %v790_v34 = vld [vmem:[%s2472_s22] sm:$0xff]  ;;  %v795_v49 = vld [vmem:[%s2472_s22 + $0x28] sm:$0xff] }
  0xb2   : > { %608 = vmatpush1.bf16.msra.mxu0 %v1931_v12  ;;  %v437_v12 = vld [vmem:[%s2450_s26 + $0xe0] sm:$0xff]  ;;  %v793_v33 = vld [vmem:[%s2472_s22 + $0x18] sm:$0xff]  ;;  %v799_v4 = vld [vmem:[%s2472_s22 + $0x48] sm:$0xff] }
  0xb3   : > { %609 = vmatprep.subr.bf16.mxu0 %v1932_v13  ;;  %1725 = vmatpush3.bf16.msra.mxu1 %v1947_v32  ;;  %v438_v13 = vld [vmem:[%s2450_s26 + $0xe8] sm:$0xff]  ;;  %v797_v51 = vld [vmem:[%s2472_s22 + $0x38] sm:$0xff]  ;;  %v794_v52 = vld [vmem:[%s2472_s22 + $0x20] sm:$0xff] }
  0xb4   : > { %1726 = vmatprep.subr.bf16.mxu1 %v1948_v54  ;;  %v791_v32 = vld [vmem:[%s2472_s22 + $0x8] sm:$0xff]  ;;  %v801_v6 = vld [vmem:[%s2472_s22 + $0x58] sm:$0xff]  ;;  %v798_v7 = vld [vmem:[%s2472_s22 + $0x40] sm:$0xff] }
  0xb6   : > { %610 = vmatpush1.bf16.msra.mxu0 %v1934_v14  ;;  %v455_v14 = vpack.c.bf16 %v438_v13, %v437_v12 }
  0xb7   : > { %611 = vmatprep.subr.bf16.mxu0 %v1935_v15  ;;  %1727 = vmatpush3.bf16.msra.mxu1 %v1949_v57  ;;  %v439_v15 = vld [vmem:[%s2450_s26 + $0xf0] sm:$0xff] }
  0xb8   : > { %1728 = vmatprep.subr.bf16.mxu1 %v1950_v59  ;;  %v456_v17 = vpack.c.bf16 %v440_v16, %v439_v15 }
  0xba   : > { %612 = vmatpush1.bf16.msra.mxu0 %v1937_v19  ;;  %v508_v19 = vshrl.u32 %v507_v18, 7 }
  0xbb   : > { %1729 = vmatpush3.bf16.msra.mxu1 %v1951_v60 }
  0xbc   : > { %1730 = vmatprep.subr.bf16.mxu1 %v1952_v61  ;;  %v513_v20 = vsub.s32 1, %v508_v19  ;;  %v509_v21 = vsub.s32 0, %v508_v19 }
  0xbd   : > { %630 = vmatmul.mubr.bf16.vlgmr.msra.gmra.mxu0 %v441_v23 }
  0xbe   : > { %639 = vmatprep.mubr.bf16.mxu0 %v2183_v0  ;;  %v2529_v24 = vrot.slane %v505_v22, %v513_v20  ;;  %v804_v20 = vld [vmem:[%s2472_s22 + $0x70] sm:$0xff] }
  0xbf   : > { %1731 = vmatpush3.bf16.msra.mxu1 %v1953_v1 }
  0xc5   : > { %640 = vmatmul.mubr.bf16.gmra.mxu0 %v442_v30 }
  0xc6   : > { %649 = vmatprep.mubr.bf16.mxu0 %v2183_v0 }
  0xcd   : > { %650 = vmatmul.mubr.bf16.gmra.mxu0 %v443_v35 }
  0xce   : > { %659 = vmatprep.mubr.bf16.mxu0 %v2183_v0 }
  0xd5   : > { %660 = vmatmul.mubr.bf16.gmra.mxu0 %v444_v38 }
  0xd6   : > { %669 = vmatprep.mubr.bf16.mxu0 %v2183_v0 }
  0xdd   : > { %670 = vmatmul.mubr.bf16.gmra.mxu0 %v445_v41 }
  0xde   : > { %679 = vmatprep.mubr.bf16.mxu0 %v2183_v0 }
  0xe5   : > { %680 = vmatmul.mubr.bf16.gmra.mxu0 %v446_v44 }
  0xe6   : > { %689 = vmatprep.mubr.bf16.mxu0 %v2183_v0 }
  0xed   : > { %690 = vmatmul.mubr.bf16.gmra.mxu0 %v447_v47  ;;  %v796_v47 = vld [vmem:[%s2472_s22 + $0x30] sm:$0xff] }
  0xee   : > { %699 = vmatprep.mubr.bf16.mxu0 %v2183_v0 }
  0xf5   : > { %700 = vmatmul.mubr.bf16.gmra.mxu0 %v448_v50 }
  0xf6   : > { %709 = vmatprep.mubr.bf16.mxu0 %v2183_v0 }
  0xfd   : > { %710 = vmatmul.mubr.bf16.gmra.mxu0 %v449_v53 }
  0xfe   : > { %719 = vmatprep.mubr.bf16.mxu0 %v2183_v0 }
 0x105   : > { %720 = vmatmul.mubr.bf16.gmra.mxu0 %v450_v58 }
 0x106   : > { %729 = vmatprep.mubr.bf16.mxu0 %v2183_v0 }
 0x10d   : > { %730 = vmatmul.mubr.bf16.gmra.mxu0 %v451_v2  ;;  %v800_v2 = vld [vmem:[%s2472_s22 + $0x50] sm:$0xff] }
 0x10e   : > { %739 = vmatprep.mubr.bf16.mxu0 %v2183_v0 }
 0x115   : > { %740 = vmatmul.mubr.bf16.gmra.mxu0 %v452_v5 }
 0x116   : > { %749 = vmatprep.mubr.bf16.mxu0 %v2183_v0 }
 0x11d   : > { %750 = vmatmul.mubr.bf16.gmra.mxu0 %v453_v8 }
 0x11e   : > { %759 = vmatprep.mubr.bf16.mxu0 %v2183_v0 }
 0x125   : > { %760 = vmatmul.mubr.bf16.gmra.mxu0 %v454_v11 }
 0x126   : > { %769 = vmatprep.mubr.bf16.mxu0 %v2183_v0 }
 0x12d   : > { %770 = vmatmul.mubr.bf16.gmra.mxu0 %v455_v14 }
 0x12e   : > { %779 = vmatprep.mubr.bf16.mxu0 %v2183_v0  ;;  %v2531_v0 = vrot.slane %v505_v22, %v509_v21  ;;  %v803_v22 = vld [vmem:[%s2472_s22 + $0x68] sm:$0xff] }
 0x135   : > { %780 = vmatmul.mubr.bf16.gmra.mxu0 %v456_v17 }
 0x17d   : > { %v631_v23 = vpop.f32.mrf.mxu0 }
 0x17e   : > { %v632_v30 = vadd.f32 %v631_v23, %v2531_v0 }
 0x17f   : > { %v633_v25 = vpop.f32.mrf.mxu0 }
 0x180   : > { %v634_v27 = vadd.f32 %v633_v25, %v2529_v24  ;;  %v854_v40 = vmul.f32 %v790_v34, %v632_v30  ;;  %v805_v25 = vld [vmem:[%s2472_s22 + $0x78] sm:$0xff] }
 0x181   : > { %v635_v26 = vpop.f32.mrf.mxu0 }
 0x182   : > { %v636_v28 = vadd.f32 %v635_v26, %v2531_v0  ;;  %v855_v38 = vmul.f32 %v791_v32, %v634_v27  ;;  %v802_v26 = vld [vmem:[%s2472_s22 + $0x60] sm:$0xff] }
 0x183   : > { %v637_v31 = vpop.f32.mrf.mxu0 }
 0x184   : > { %v638_v35 = vadd.f32 %v637_v31, %v2529_v24  ;;  %v856_v36 = vmul.f32 %v792_v29, %v636_v28 }
 0x185   : > { %v641_v37 = vpop.f32.mrf.mxu0 }
 0x186   : > { %v857_v39 = vmul.f32 %v793_v33, %v638_v35  ;;  %v950_v44 = vpack.c.bf16 %v856_v36, %v854_v40  ;;  %v642_v48 = vadd.f32 %v641_v37, %v2531_v0 }
 0x187   : > { %v643_v41 = vpop.f32.mrf.mxu0 }
 0x188   : > { %v951_v42 = vpack.c.bf16 %v857_v39, %v855_v38  ;;  %v644_v45 = vadd.f32 %v643_v41, %v2529_v24  ;;  %v858_v58 = vmul.f32 %v794_v52, %v642_v48  ;;  %v808_v39 = vld [vmem:[%s2472_s22 + $0x90] sm:$0xff]  ;;  %v807_v41 = vld [vmem:[%s2472_s22 + $0x88] sm:$0xff] }
 0x189   : > { %v645_v43 = vpop.f32.mrf.mxu0 }
 0x18a   : > { %v646_v46 = vadd.f32 %v645_v43, %v2531_v0  ;;  %1142 = vmatprep.mubr.bf16.mxu1 %v951_v42  ;;  %v859_v56 = vmul.f32 %v795_v49, %v644_v45  ;;  %v809_v43 = vld [vmem:[%s2472_s22 + $0x98] sm:$0xff] }
 0x18b   : > { %v647_v50 = vpop.f32.mrf.mxu0  ;;  %1143 = vmatmul.mubr.bf16.vlgmr.msra.gmra.mxu1 %v950_v44  ;;  %v806_v44 = vld [vmem:[%s2472_s22 + $0x80] sm:$0xff] }
 0x18c   : > { %v648_v53 = vadd.f32 %v647_v50, %v2529_v24  ;;  %v860_v54 = vmul.f32 %v796_v47, %v646_v46 }
 0x18d   : > { %v651_v55 = vpop.f32.mrf.mxu0 }
 0x18e   : > { %v861_v57 = vmul.f32 %v797_v51, %v648_v53  ;;  %v952_v62 = vpack.c.bf16 %v860_v54, %v858_v58  ;;  %v652_v3 = vadd.f32 %v651_v55, %v2531_v0 }
 0x18f   : > { %v653_v59 = vpop.f32.mrf.mxu0 }
 0x190   : > { %v953_v60 = vpack.c.bf16 %v861_v57, %v859_v56  ;;  %v654_v63 = vadd.f32 %v653_v59, %v2529_v24  ;;  %v862_v13 = vmul.f32 %v798_v7, %v652_v3  ;;  %v812_v57 = vld [vmem:[%s2472_s22 + $0xb0] sm:$0xff]  ;;  %v811_v59 = vld [vmem:[%s2472_s22 + $0xa8] sm:$0xff] }
 0x191   : > { %v655_v61 = vpop.f32.mrf.mxu0 }
 0x192   : > { %v656_v1 = vadd.f32 %v655_v61, %v2531_v0  ;;  %1150 = vmatprep.mubr.bf16.mxu1 %v953_v60  ;;  %v863_v11 = vmul.f32 %v799_v4, %v654_v63  ;;  %v813_v61 = vld [vmem:[%s2472_s22 + $0xb8] sm:$0xff] }
 0x193   : > { %v657_v5 = vpop.f32.mrf.mxu0  ;;  %1151 = vmatmul.mubr.bf16.gmra.mxu1 %v952_v62  ;;  %v810_v62 = vld [vmem:[%s2472_s22 + $0xa0] sm:$0xff] }
 0x194   : > { %v658_v8 = vadd.f32 %v657_v5, %v2529_v24  ;;  %v864_v9 = vmul.f32 %v800_v2, %v656_v1 }
 0x195   : > { %v661_v10 = vpop.f32.mrf.mxu0 }
 0x196   : > { %v865_v12 = vmul.f32 %v801_v6, %v658_v8  ;;  %v954_v17 = vpack.c.bf16 %v864_v9, %v862_v13  ;;  %v662_v21 = vadd.f32 %v661_v10, %v2531_v0 }
 0x197   : > { %v663_v14 = vpop.f32.mrf.mxu0 }
 0x198   : > { %v955_v15 = vpack.c.bf16 %v865_v12, %v863_v11  ;;  %v664_v18 = vadd.f32 %v663_v14, %v2529_v24  ;;  %v866_v32 = vmul.f32 %v802_v26, %v662_v21  ;;  %v816_v12 = vld [vmem:[%s2472_s22 + $0xd0] sm:$0xff]  ;;  %v815_v14 = vld [vmem:[%s2472_s22 + $0xc8] sm:$0xff] }
 0x199   : > { %v665_v16 = vpop.f32.mrf.mxu0 }
 0x19a   : > { %v666_v19 = vadd.f32 %v665_v16, %v2531_v0  ;;  %1158 = vmatprep.mubr.bf16.mxu1 %v955_v15  ;;  %v867_v30 = vmul.f32 %v803_v22, %v664_v18  ;;  %v817_v16 = vld [vmem:[%s2472_s22 + $0xd8] sm:$0xff] }
 0x19b   : > { %v667_v23 = vpop.f32.mrf.mxu0  ;;  %1159 = vmatmul.mubr.bf16.gmra.mxu1 %v954_v17  ;;  %v814_v17 = vld [vmem:[%s2472_s22 + $0xc0] sm:$0xff] }
 0x19c   : > { %v668_v27 = vadd.f32 %v667_v23, %v2529_v24  ;;  %v868_v28 = vmul.f32 %v804_v20, %v666_v19 }
 0x19d   : > { %v671_v29 = vpop.f32.mrf.mxu0 }
 0x19e   : > { %v869_v31 = vmul.f32 %v805_v25, %v668_v27  ;;  %v956_v36 = vpack.c.bf16 %v868_v28, %v866_v32  ;;  %v672_v40 = vadd.f32 %v671_v29, %v2531_v0 }
 0x19f   : > { %v673_v33 = vpop.f32.mrf.mxu0 }
 0x1a0   : > { %v957_v34 = vpack.c.bf16 %v869_v31, %v867_v30  ;;  %v674_v37 = vadd.f32 %v673_v33, %v2529_v24  ;;  %v870_v50 = vmul.f32 %v806_v44, %v672_v40  ;;  %v820_v31 = vld [vmem:[%s2472_s22 + $0xf0] sm:$0xff]  ;;  %v819_v33 = vld [vmem:[%s2472_s22 + $0xe8] sm:$0xff] }
 0x1a1   : > { %v675_v35 = vpop.f32.mrf.mxu0 }
 0x1a2   : > { %v676_v38 = vadd.f32 %v675_v35, %v2531_v0  ;;  %1166 = vmatprep.mubr.bf16.mxu1 %v957_v34  ;;  %v871_v48 = vmul.f32 %v807_v41, %v674_v37  ;;  %v821_v35 = vld [vmem:[%s2472_s22 + $0xf8] sm:$0xff] }
 0x1a3   : > { %v677_v42 = vpop.f32.mrf.mxu0  ;;  %1167 = vmatmul.mubr.bf16.gmra.mxu1 %v956_v36  ;;  %v818_v36 = vld [vmem:[%s2472_s22 + $0xe0] sm:$0xff] }
 0x1a4   : > { %v678_v45 = vadd.f32 %v677_v42, %v2529_v24  ;;  %v872_v46 = vmul.f32 %v808_v39, %v676_v38 }
 0x1a5   : > { %v681_v47 = vpop.f32.mrf.mxu0 }
 0x1a6   : > { %v873_v49 = vmul.f32 %v809_v43, %v678_v45  ;;  %v958_v54 = vpack.c.bf16 %v872_v46, %v870_v50  ;;  %v682_v58 = vadd.f32 %v681_v47, %v2531_v0 }
 0x1a7   : > { %v683_v51 = vpop.f32.mrf.mxu0 }
 0x1a8   : > { %v959_v52 = vpack.c.bf16 %v873_v49, %v871_v48  ;;  %v684_v55 = vadd.f32 %v683_v51, %v2529_v24  ;;  %v874_v5 = vmul.f32 %v810_v62, %v682_v58  ;;  %v824_v49 = vld [vmem:[%s2472_s22 + $0x110] sm:$0xff]  ;;  %v823_v51 = vld [vmem:[%s2472_s22 + $0x108] sm:$0xff] }
 0x1a9   : > { %v685_v53 = vpop.f32.mrf.mxu0 }
 0x1aa   : > { %v686_v56 = vadd.f32 %v685_v53, %v2531_v0  ;;  %1174 = vmatprep.mubr.bf16.mxu1 %v959_v52  ;;  %v875_v3 = vmul.f32 %v811_v59, %v684_v55  ;;  %v825_v53 = vld [vmem:[%s2472_s22 + $0x118] sm:$0xff] }
 0x1ab   : > { %v687_v60 = vpop.f32.mrf.mxu0  ;;  %1175 = vmatmul.mubr.bf16.gmra.mxu1 %v958_v54  ;;  %v822_v54 = vld [vmem:[%s2472_s22 + $0x100] sm:$0xff] }
 0x1ac   : > { %v688_v63 = vadd.f32 %v687_v60, %v2529_v24  ;;  %v876_v1 = vmul.f32 %v812_v57, %v686_v56 }
 0x1ad   : > { %v691_v2 = vpop.f32.mrf.mxu0 }
 0x1ae   : > { %v877_v4 = vmul.f32 %v813_v61, %v688_v63  ;;  %v960_v9 = vpack.c.bf16 %v876_v1, %v874_v5  ;;  %v692_v13 = vadd.f32 %v691_v2, %v2531_v0 }
 0x1af   : > { %v693_v6 = vpop.f32.mrf.mxu0 }
 0x1b0   : > { %v961_v7 = vpack.c.bf16 %v877_v4, %v875_v3  ;;  %v694_v10 = vadd.f32 %v693_v6, %v2529_v24  ;;  %v878_v23 = vmul.f32 %v814_v17, %v692_v13  ;;  %v828_v4 = vld [vmem:[%s2472_s22 + $0x130] sm:$0xff]  ;;  %v827_v6 = vld [vmem:[%s2472_s22 + $0x128] sm:$0xff] }
 0x1b1   : > { %v695_v8 = vpop.f32.mrf.mxu0 }
 0x1b2   : > { %v696_v11 = vadd.f32 %v695_v8, %v2531_v0  ;;  %1182 = vmatprep.mubr.bf16.mxu1 %v961_v7  ;;  %v879_v21 = vmul.f32 %v815_v14, %v694_v10  ;;  %v829_v8 = vld [vmem:[%s2472_s22 + $0x138] sm:$0xff] }
 0x1b3   : > { %v697_v15 = vpop.f32.mrf.mxu0  ;;  %1183 = vmatmul.mubr.bf16.gmra.mxu1 %v960_v9  ;;  %v826_v9 = vld [vmem:[%s2472_s22 + $0x120] sm:$0xff] }
 0x1b4   : > { %v698_v18 = vadd.f32 %v697_v15, %v2529_v24  ;;  %v880_v19 = vmul.f32 %v816_v12, %v696_v11 }
 0x1b5   : > { %v701_v20 = vpop.f32.mrf.mxu0 }
 0x1b6   : > { %v881_v22 = vmul.f32 %v817_v16, %v698_v18  ;;  %v962_v28 = vpack.c.bf16 %v880_v19, %v878_v23  ;;  %v702_v32 = vadd.f32 %v701_v20, %v2531_v0 }
 0x1b7   : > { %v703_v25 = vpop.f32.mrf.mxu0 }
 0x1b8   : > { %v963_v26 = vpack.c.bf16 %v881_v22, %v879_v21  ;;  %v704_v29 = vadd.f32 %v703_v25, %v2529_v24  ;;  %v882_v42 = vmul.f32 %v818_v36, %v702_v32  ;;  %v832_v22 = vld [vmem:[%s2472_s22 + $0x150] sm:$0xff]  ;;  %v831_v25 = vld [vmem:[%s2472_s22 + $0x148] sm:$0xff] }
 0x1b9   : > { %v705_v27 = vpop.f32.mrf.mxu0 }
 0x1ba   : > { %v706_v30 = vadd.f32 %v705_v27, %v2531_v0  ;;  %1190 = vmatprep.mubr.bf16.mxu1 %v963_v26  ;;  %v883_v40 = vmul.f32 %v819_v33, %v704_v29  ;;  %v833_v27 = vld [vmem:[%s2472_s22 + $0x158] sm:$0xff] }
 0x1bb   : > { %v707_v34 = vpop.f32.mrf.mxu0  ;;  %1191 = vmatmul.mubr.bf16.gmra.mxu1 %v962_v28  ;;  %v830_v28 = vld [vmem:[%s2472_s22 + $0x140] sm:$0xff] }
 0x1bc   : > { %v708_v37 = vadd.f32 %v707_v34, %v2529_v24  ;;  %v884_v38 = vmul.f32 %v820_v31, %v706_v30 }
 0x1bd   : > { %v711_v39 = vpop.f32.mrf.mxu0 }
 0x1be   : > { %v885_v41 = vmul.f32 %v821_v35, %v708_v37  ;;  %v964_v46 = vpack.c.bf16 %v884_v38, %v882_v42  ;;  %v712_v50 = vadd.f32 %v711_v39, %v2531_v0 }
 0x1bf   : > { %v713_v43 = vpop.f32.mrf.mxu0 }
 0x1c0   : > { %v965_v44 = vpack.c.bf16 %v885_v41, %v883_v40  ;;  %v714_v47 = vadd.f32 %v713_v43, %v2529_v24  ;;  %v886_v60 = vmul.f32 %v822_v54, %v712_v50  ;;  %v836_v41 = vld [vmem:[%s2472_s22 + $0x170] sm:$0xff]  ;;  %v835_v43 = vld [vmem:[%s2472_s22 + $0x168] sm:$0xff] }
 0x1c1   : > { %v715_v45 = vpop.f32.mrf.mxu0 }
 0x1c2   : > { %v716_v48 = vadd.f32 %v715_v45, %v2531_v0  ;;  %1198 = vmatprep.mubr.bf16.mxu1 %v965_v44  ;;  %v887_v58 = vmul.f32 %v823_v51, %v714_v47  ;;  %v837_v45 = vld [vmem:[%s2472_s22 + $0x178] sm:$0xff] }
 0x1c3   : > { %v717_v52 = vpop.f32.mrf.mxu0  ;;  %1199 = vmatmul.mubr.bf16.gmra.mxu1 %v964_v46  ;;  %v834_v46 = vld [vmem:[%s2472_s22 + $0x160] sm:$0xff] }
 0x1c4   : > { %v718_v55 = vadd.f32 %v717_v52, %v2529_v24  ;;  %v888_v56 = vmul.f32 %v824_v49, %v716_v48 }
 0x1c5   : > { %v721_v57 = vpop.f32.mrf.mxu0 }
 0x1c6   : > { %v889_v59 = vmul.f32 %v825_v53, %v718_v55  ;;  %v966_v1 = vpack.c.bf16 %v888_v56, %v886_v60  ;;  %v722_v5 = vadd.f32 %v721_v57, %v2531_v0 }
 0x1c7   : > { %v723_v61 = vpop.f32.mrf.mxu0 }
 0x1c8   : > { %v967_v62 = vpack.c.bf16 %v889_v59, %v887_v58  ;;  %v724_v2 = vadd.f32 %v723_v61, %v2529_v24  ;;  %v890_v15 = vmul.f32 %v826_v9, %v722_v5  ;;  %v840_v59 = vld [vmem:[%s2472_s22 + $0x190] sm:$0xff]  ;;  %v839_v61 = vld [vmem:[%s2472_s22 + $0x188] sm:$0xff] }
 0x1c9   : > { %v725_v63 = vpop.f32.mrf.mxu0 }
 0x1ca   : > { %v726_v3 = vadd.f32 %v725_v63, %v2531_v0  ;;  %1206 = vmatprep.mubr.bf16.mxu1 %v967_v62  ;;  %v891_v13 = vmul.f32 %v827_v6, %v724_v2  ;;  %v841_v63 = vld [vmem:[%s2472_s22 + $0x198] sm:$0xff] }
 0x1cb   : > { %v727_v7 = vpop.f32.mrf.mxu0  ;;  %1207 = vmatmul.mubr.bf16.gmra.mxu1 %v966_v1  ;;  %v838_v1 = vld [vmem:[%s2472_s22 + $0x180] sm:$0xff] }
 0x1cc   : > { %v728_v10 = vadd.f32 %v727_v7, %v2529_v24  ;;  %v892_v11 = vmul.f32 %v828_v4, %v726_v3 }
 0x1cd   : > { %v731_v12 = vpop.f32.mrf.mxu0 }
 0x1ce   : > { %v893_v14 = vmul.f32 %v829_v8, %v728_v10  ;;  %v968_v19 = vpack.c.bf16 %v892_v11, %v890_v15  ;;  %v732_v23 = vadd.f32 %v731_v12, %v2531_v0 }
 0x1cf   : > { %v733_v16 = vpop.f32.mrf.mxu0 }
 0x1d0   : > { %v969_v17 = vpack.c.bf16 %v893_v14, %v891_v13  ;;  %v734_v20 = vadd.f32 %v733_v16, %v2529_v24  ;;  %v894_v34 = vmul.f32 %v830_v28, %v732_v23  ;;  %v844_v14 = vld [vmem:[%s2472_s22 + $0x1b0] sm:$0xff]  ;;  %v843_v16 = vld [vmem:[%s2472_s22 + $0x1a8] sm:$0xff] }
 0x1d1   : > { %v735_v18 = vpop.f32.mrf.mxu0 }
 0x1d2   : > { %v736_v21 = vadd.f32 %v735_v18, %v2531_v0  ;;  %1214 = vmatprep.mubr.bf16.mxu1 %v969_v17  ;;  %v895_v32 = vmul.f32 %v831_v25, %v734_v20  ;;  %v845_v18 = vld [vmem:[%s2472_s22 + $0x1b8] sm:$0xff] }
 0x1d3   : > { %v737_v26 = vpop.f32.mrf.mxu0  ;;  %1215 = vmatmul.mubr.bf16.gmra.mxu1 %v968_v19  ;;  %v842_v19 = vld [vmem:[%s2472_s22 + $0x1a0] sm:$0xff] }
 0x1d4   : > { %v738_v29 = vadd.f32 %v737_v26, %v2529_v24  ;;  %v896_v30 = vmul.f32 %v832_v22, %v736_v21 }
 0x1d5   : > { %v741_v31 = vpop.f32.mrf.mxu0 }
 0x1d6   : > { %v897_v33 = vmul.f32 %v833_v27, %v738_v29  ;;  %v970_v38 = vpack.c.bf16 %v896_v30, %v894_v34  ;;  %v742_v42 = vadd.f32 %v741_v31, %v2531_v0 }
 0x1d7   : > { %v743_v35 = vpop.f32.mrf.mxu0 }
 0x1d8   : > { %v971_v36 = vpack.c.bf16 %v897_v33, %v895_v32  ;;  %v744_v39 = vadd.f32 %v743_v35, %v2529_v24  ;;  %v898_v52 = vmul.f32 %v834_v46, %v742_v42  ;;  %v848_v33 = vld [vmem:[%s2472_s22 + $0x1d0] sm:$0xff]  ;;  %v847_v35 = vld [vmem:[%s2472_s22 + $0x1c8] sm:$0xff] }
 0x1d9   : > { %v745_v37 = vpop.f32.mrf.mxu0 }
 0x1da   : > { %v746_v40 = vadd.f32 %v745_v37, %v2531_v0  ;;  %1222 = vmatprep.mubr.bf16.mxu1 %v971_v36  ;;  %v899_v50 = vmul.f32 %v835_v43, %v744_v39  ;;  %v849_v37 = vld [vmem:[%s2472_s22 + $0x1d8] sm:$0xff] }
 0x1db   : > { %v747_v44 = vpop.f32.mrf.mxu0  ;;  %1223 = vmatmul.mubr.bf16.gmra.mxu1 %v970_v38  ;;  %v846_v38 = vld [vmem:[%s2472_s22 + $0x1c0] sm:$0xff] }
 0x1dc   : > { %v748_v47 = vadd.f32 %v747_v44, %v2529_v24  ;;  %v900_v48 = vmul.f32 %v836_v41, %v746_v40 }
 0x1dd   : > { %v751_v49 = vpop.f32.mrf.mxu0 }
 0x1de   : > { %v901_v51 = vmul.f32 %v837_v45, %v748_v47  ;;  %v972_v56 = vpack.c.bf16 %v900_v48, %v898_v52  ;;  %v752_v60 = vadd.f32 %v751_v49, %v2531_v0 }
 0x1df   : > { %v753_v53 = vpop.f32.mrf.mxu0 }
 0x1e0   : > { %v973_v54 = vpack.c.bf16 %v901_v51, %v899_v50  ;;  %v754_v57 = vadd.f32 %v753_v53, %v2529_v24  ;;  %v902_v7 = vmul.f32 %v838_v1, %v752_v60  ;;  %v852_v51 = vld [vmem:[%s2472_s22 + $0x1f0] sm:$0xff]  ;;  %v851_v53 = vld [vmem:[%s2472_s22 + $0x1e8] sm:$0xff] }
 0x1e1   : > { %v755_v55 = vpop.f32.mrf.mxu0 }
 0x1e2   : > { %v756_v58 = vadd.f32 %v755_v55, %v2531_v0  ;;  %1230 = vmatprep.mubr.bf16.mxu1 %v973_v54  ;;  %v903_v5 = vmul.f32 %v839_v61, %v754_v57  ;;  %v853_v55 = vld [vmem:[%s2472_s22 + $0x1f8] sm:$0xff] }
 0x1e3   : > { %v757_v62 = vpop.f32.mrf.mxu0  ;;  %1231 = vmatmul.mubr.bf16.gmra.mxu1 %v972_v56  ;;  %v850_v56 = vld [vmem:[%s2472_s22 + $0x1e0] sm:$0xff] }
 0x1e4   : > { %v758_v2 = vadd.f32 %v757_v62, %v2529_v24  ;;  %v904_v3 = vmul.f32 %v840_v59, %v756_v58 }
 0x1e5   : > { %v761_v4 = vpop.f32.mrf.mxu0 }
 0x1e6   : > { %v905_v6 = vmul.f32 %v841_v63, %v758_v2  ;;  %v974_v11 = vpack.c.bf16 %v904_v3, %v902_v7  ;;  %v762_v15 = vadd.f32 %v761_v4, %v2531_v0  ;;  %v2664_v2 = vld [vmem:[%s2875_s11] ss:$0 sm:$0xff] }
 0x1e7   : > { %v763_v8 = vpop.f32.mrf.mxu0 }
 0x1e8   : > { %v975_v9 = vpack.c.bf16 %v905_v6, %v903_v5  ;;  %v764_v12 = vadd.f32 %v763_v8, %v2529_v24  ;;  %v906_v26 = vmul.f32 %v842_v19, %v762_v15  ;;  %v1408_v15 = vld [vmem:[%s2457_s17 + $0x10] sm:$0xff] }
 0x1e9   : > { %v765_v10 = vpop.f32.mrf.mxu0 }
 0x1ea   : > { %v766_v13 = vadd.f32 %v765_v10, %v2531_v0  ;;  %1238 = vmatprep.mubr.bf16.mxu1 %v975_v9  ;;  %v907_v23 = vmul.f32 %v843_v16, %v764_v12  ;;  %v1407_v9 = vld [vmem:[%s2457_s17 + $0x8] sm:$0xff] }
 0x1eb   : > { %v767_v17 = vpop.f32.mrf.mxu0  ;;  %1239 = vmatmul.mubr.bf16.gmra.mxu1 %v974_v11 }
 0x1ec   : > { %v768_v20 = vadd.f32 %v767_v17, %v2529_v24  ;;  %v908_v21 = vmul.f32 %v844_v14, %v766_v13 }
 0x1ed   : > { %v771_v22 = vpop.f32.mrf.mxu0 }
 0x1ee   : > { %v909_v25 = vmul.f32 %v845_v18, %v768_v20  ;;  %v976_v30 = vpack.c.bf16 %v908_v21, %v906_v26  ;;  %v772_v34 = vadd.f32 %v771_v22, %v2531_v0  ;;  %v1409_v21 = vld [vmem:[%s2457_s17 + $0x18] sm:$0xff] }
 0x1ef   : > { %v773_v27 = vpop.f32.mrf.mxu0 }
 0x1f0   : > { %v977_v28 = vpack.c.bf16 %v909_v25, %v907_v23  ;;  %v774_v31 = vadd.f32 %v773_v27, %v2529_v24  ;;  %v910_v44 = vmul.f32 %v846_v38, %v772_v34  ;;  %v1411_v34 = vld [vmem:[%s2457_s17 + $0x28] sm:$0xff] }
 0x1f1   : > { %v775_v29 = vpop.f32.mrf.mxu0 }
 0x1f2   : > { %v776_v32 = vadd.f32 %v775_v29, %v2531_v0  ;;  %1246 = vmatprep.mubr.bf16.mxu1 %v977_v28  ;;  %v911_v42 = vmul.f32 %v847_v35, %v774_v31  ;;  %v1410_v28 = vld [vmem:[%s2457_s17 + $0x20] sm:$0xff] }
 0x1f3   : > { %v777_v36 = vpop.f32.mrf.mxu0  ;;  %1247 = vmatmul.mubr.bf16.gmra.mxu1 %v976_v30 }
 0x1f4   : > { %v778_v39 = vadd.f32 %v777_v36, %v2529_v24  ;;  %v912_v40 = vmul.f32 %v848_v33, %v776_v32 }
 0x1f5   : > { %v781_v41 = vpop.f32.mrf.mxu0 }
 0x1f6   : > { %v913_v43 = vmul.f32 %v849_v37, %v778_v39  ;;  %v978_v48 = vpack.c.bf16 %v912_v40, %v910_v44  ;;  %v782_v52 = vadd.f32 %v781_v41, %v2531_v0  ;;  %v1412_v40 = vld [vmem:[%s2457_s17 + $0x30] sm:$0xff] }
 0x1f7   : > { %v783_v45 = vpop.f32.mrf.mxu0 }
 0x1f8   : > { %v979_v46 = vpack.c.bf16 %v913_v43, %v911_v42  ;;  %v784_v49 = vadd.f32 %v783_v45, %v2529_v24  ;;  %v914_v61 = vmul.f32 %v850_v56, %v782_v52  ;;  %v1414_v52 = vld [vmem:[%s2457_s17 + $0x40] sm:$0xff] }
 0x1f9   : > { %v785_v47 = vpop.f32.mrf.mxu0 }
 0x1fa   : > { %v786_v50 = vadd.f32 %v785_v47, %v2531_v0  ;;  %1254 = vmatprep.mubr.bf16.mxu1 %v979_v46  ;;  %v915_v59 = vmul.f32 %v851_v53, %v784_v49  ;;  %v1413_v46 = vld [vmem:[%s2457_s17 + $0x38] sm:$0xff] }
 0x1fb   : > { %v787_v54 = vpop.f32.mrf.mxu0  ;;  %1255 = vmatmul.mubr.bf16.gmra.mxu1 %v978_v48 }
 0x1fc   : > { %v788_v57 = vadd.f32 %v787_v54, %v2529_v24  ;;  %v916_v58 = vmul.f32 %v852_v51, %v786_v50  ;;  %v1406_v24 = vld [vmem:[%s2457_s17] sm:$0xff] }
 0x1fe   : > { %v917_v60 = vmul.f32 %v853_v55, %v788_v57  ;;  %v980_v63 = vpack.c.bf16 %v916_v58, %v914_v61  ;;  %v1415_v58 = vld [vmem:[%s2457_s17 + $0x48] sm:$0xff] }
 0x200   : > { %v981_v62 = vpack.c.bf16 %v917_v60, %v915_v59 }
 0x202   : > { %1262 = vmatprep.mubr.bf16.mxu1 %v981_v62 }
 0x203   : > { %1263 = vmatmul.mubr.bf16.gmra.mxu1 %v980_v63 }
 0x24b   : > { %v1732_v1 = vpop.f32.mrf.mxu1 }
 0x24d   : > { %v1733_v0 = vpop.f32.mrf.mxu1 }
 0x24e   : > { %v1734_v3 = vadd.f32 %v1733_v0, %v1732_v1  ;;  %v1416_v1 = vld [vmem:[%s2457_s17 + $0x50] sm:$0xff] }
 0x24f   : > { %v1735_v4 = vpop.f32.mrf.mxu1 }
 0x250   : > { %v1374_v5 = vadd.f32 %v1734_v3, %v2664_v2 }
 0x251   : > { %v1736_v6 = vpop.f32.mrf.mxu1 }
 0x252   : > { %v1438_v7 = vadd.f32 %v1406_v24, %v1374_v5  ;;  %v1737_v8 = vadd.f32 %v1736_v6, %v1735_v4  ;;  %v1417_v6 = vld [vmem:[%s2457_s17 + $0x58] sm:$0xff] }
 0x253   : > { %v1738_v10 = vpop.f32.mrf.mxu1 }
 0x254   : > { %1470 = vst [vmem:[%s2670_s23] sm:$0xff] %v1438_v7  ;;  %v1375_v11 = vadd.f32 %v1737_v8, %v2664_v2 }
 0x255   : > { %v1739_v12 = vpop.f32.mrf.mxu1 }
 0x256   : > { %v1439_v13 = vadd.f32 %v1407_v9, %v1375_v11  ;;  %v1740_v14 = vadd.f32 %v1739_v12, %v1738_v10  ;;  %v1418_v12 = vld [vmem:[%s2457_s17 + $0x60] sm:$0xff] }
 0x257   : > { %v1741_v16 = vpop.f32.mrf.mxu1 }
 0x258   : > { %1471 = vst [vmem:[%s2670_s23 + $0x8] sm:$0xff] %v1439_v13  ;;  %v1376_v17 = vadd.f32 %v1740_v14, %v2664_v2 }
 0x259   : > { %v1742_v18 = vpop.f32.mrf.mxu1 }
 0x25a   : > { %v1440_v19 = vadd.f32 %v1408_v15, %v1376_v17  ;;  %v1743_v20 = vadd.f32 %v1742_v18, %v1741_v16  ;;  %v1419_v18 = vld [vmem:[%s2457_s17 + $0x68] sm:$0xff] }
 0x25b   : > { %v1744_v22 = vpop.f32.mrf.mxu1 }
 0x25c   : > { %1472 = vst [vmem:[%s2670_s23 + $0x10] sm:$0xff] %v1440_v19  ;;  %v1377_v23 = vadd.f32 %v1743_v20, %v2664_v2 }
 0x25d   : > { %v1745_v25 = vpop.f32.mrf.mxu1 }
 0x25e   : > { %v1441_v26 = vadd.f32 %v1409_v21, %v1377_v23  ;;  %v1746_v27 = vadd.f32 %v1745_v25, %v1744_v22  ;;  %v1420_v25 = vld [vmem:[%s2457_s17 + $0x70] sm:$0xff] }
 0x25f   : > { %v1747_v29 = vpop.f32.mrf.mxu1 }
 0x260   : > { %1473 = vst [vmem:[%s2670_s23 + $0x18] sm:$0xff] %v1441_v26  ;;  %v1378_v30 = vadd.f32 %v1746_v27, %v2664_v2 }
 0x261   : > { %v1748_v31 = vpop.f32.mrf.mxu1 }
 0x262   : > { %v1442_v32 = vadd.f32 %v1410_v28, %v1378_v30  ;;  %v1749_v33 = vadd.f32 %v1748_v31, %v1747_v29  ;;  %v1421_v31 = vld [vmem:[%s2457_s17 + $0x78] sm:$0xff] }
 0x263   : > { %v1750_v35 = vpop.f32.mrf.mxu1 }
 0x264   : > { %1474 = vst [vmem:[%s2670_s23 + $0x20] sm:$0xff] %v1442_v32  ;;  %v1379_v36 = vadd.f32 %v1749_v33, %v2664_v2 }
 0x265   : > { %v1751_v37 = vpop.f32.mrf.mxu1 }
 0x266   : > { %v1443_v38 = vadd.f32 %v1411_v34, %v1379_v36  ;;  %v1752_v39 = vadd.f32 %v1751_v37, %v1750_v35  ;;  %v1422_v37 = vld [vmem:[%s2457_s17 + $0x80] sm:$0xff] }
 0x267   : > { %v1753_v41 = vpop.f32.mrf.mxu1 }
 0x268   : > { %1475 = vst [vmem:[%s2670_s23 + $0x28] sm:$0xff] %v1443_v38  ;;  %v1380_v42 = vadd.f32 %v1752_v39, %v2664_v2 }
 0x269   : > { %v1754_v43 = vpop.f32.mrf.mxu1 }
 0x26a   : > { %v1444_v44 = vadd.f32 %v1412_v40, %v1380_v42  ;;  %v1755_v45 = vadd.f32 %v1754_v43, %v1753_v41  ;;  %v1423_v43 = vld [vmem:[%s2457_s17 + $0x88] sm:$0xff] }
 0x26b   : > { %v1756_v47 = vpop.f32.mrf.mxu1 }
 0x26c   : > { %1476 = vst [vmem:[%s2670_s23 + $0x30] sm:$0xff] %v1444_v44  ;;  %v1381_v48 = vadd.f32 %v1755_v45, %v2664_v2 }
 0x26d   : > { %v1757_v49 = vpop.f32.mrf.mxu1 }
 0x26e   : > { %v1445_v50 = vadd.f32 %v1413_v46, %v1381_v48  ;;  %v1758_v51 = vadd.f32 %v1757_v49, %v1756_v47  ;;  %v1424_v49 = vld [vmem:[%s2457_s17 + $0x90] sm:$0xff] }
 0x26f   : > { %v1759_v53 = vpop.f32.mrf.mxu1 }
 0x270   : > { %1477 = vst [vmem:[%s2670_s23 + $0x38] sm:$0xff] %v1445_v50  ;;  %v1382_v54 = vadd.f32 %v1758_v51, %v2664_v2 }
 0x271   : > { %v1760_v55 = vpop.f32.mrf.mxu1 }
 0x272   : > { %v1446_v56 = vadd.f32 %v1414_v52, %v1382_v54  ;;  %v1761_v57 = vadd.f32 %v1760_v55, %v1759_v53  ;;  %v1425_v55 = vld [vmem:[%s2457_s17 + $0x98] sm:$0xff] }
 0x273   : > { %v1762_v59 = vpop.f32.mrf.mxu1 }
 0x274   : > { %1478 = vst [vmem:[%s2670_s23 + $0x40] sm:$0xff] %v1446_v56  ;;  %v1383_v60 = vadd.f32 %v1761_v57, %v2664_v2 }
 0x275   : > { %v1763_v61 = vpop.f32.mrf.mxu1 }
 0x276   : > { %v1447_v62 = vadd.f32 %v1415_v58, %v1383_v60  ;;  %v1764_v63 = vadd.f32 %v1763_v61, %v1762_v59  ;;  %v1426_v61 = vld [vmem:[%s2457_s17 + $0xa0] sm:$0xff] }
 0x277   : > { %v1765_v0 = vpop.f32.mrf.mxu1 }
 0x278   : > { %1479 = vst [vmem:[%s2670_s23 + $0x48] sm:$0xff] %v1447_v62  ;;  %v1384_v3 = vadd.f32 %v1764_v63, %v2664_v2 }
 0x279   : > { %v1766_v24 = vpop.f32.mrf.mxu1 }
 0x27a   : > { %v1448_v4 = vadd.f32 %v1416_v1, %v1384_v3  ;;  %v1767_v5 = vadd.f32 %v1766_v24, %v1765_v0  ;;  %v1427_v24 = vld [vmem:[%s2457_s17 + $0xa8] sm:$0xff] }
 0x27b   : > { %v1768_v7 = vpop.f32.mrf.mxu1 }
 0x27c   : > { %1480 = vst [vmem:[%s2670_s23 + $0x50] sm:$0xff] %v1448_v4  ;;  %v1385_v8 = vadd.f32 %v1767_v5, %v2664_v2 }
 0x27d   : > { %v1769_v9 = vpop.f32.mrf.mxu1 }
 0x27e   : > { %v1449_v10 = vadd.f32 %v1417_v6, %v1385_v8  ;;  %v1770_v11 = vadd.f32 %v1769_v9, %v1768_v7  ;;  %v1428_v9 = vld [vmem:[%s2457_s17 + $0xb0] sm:$0xff] }
 0x27f   : > { %v1771_v13 = vpop.f32.mrf.mxu1 }
 0x280   : > { %1481 = vst [vmem:[%s2670_s23 + $0x58] sm:$0xff] %v1449_v10  ;;  %v1386_v14 = vadd.f32 %v1770_v11, %v2664_v2 }
 0x281   : > { %v1772_v15 = vpop.f32.mrf.mxu1 }
 0x282   : > { %v1450_v16 = vadd.f32 %v1418_v12, %v1386_v14  ;;  %v1773_v17 = vadd.f32 %v1772_v15, %v1771_v13  ;;  %v1429_v15 = vld [vmem:[%s2457_s17 + $0xb8] sm:$0xff] }
 0x283   : > { %v1774_v19 = vpop.f32.mrf.mxu1 }
 0x284   : > { %1482 = vst [vmem:[%s2670_s23 + $0x60] sm:$0xff] %v1450_v16  ;;  %v1387_v20 = vadd.f32 %v1773_v17, %v2664_v2 }
 0x285   : > { %v1775_v21 = vpop.f32.mrf.mxu1 }
 0x286   : > { %v1451_v22 = vadd.f32 %v1419_v18, %v1387_v20  ;;  %v1776_v23 = vadd.f32 %v1775_v21, %v1774_v19  ;;  %v1430_v21 = vld [vmem:[%s2457_s17 + $0xc0] sm:$0xff] }
 0x287   : > { %v1777_v26 = vpop.f32.mrf.mxu1 }
 0x288   : > { %1483 = vst [vmem:[%s2670_s23 + $0x68] sm:$0xff] %v1451_v22  ;;  %v1388_v27 = vadd.f32 %v1776_v23, %v2664_v2 }
 0x289   : > { %v1778_v28 = vpop.f32.mrf.mxu1 }
 0x28a   : > { %v1452_v29 = vadd.f32 %v1420_v25, %v1388_v27  ;;  %v1779_v30 = vadd.f32 %v1778_v28, %v1777_v26  ;;  %v1431_v28 = vld [vmem:[%s2457_s17 + $0xc8] sm:$0xff] }
 0x28b   : > { %v1780_v32 = vpop.f32.mrf.mxu1 }
 0x28c   : > { %1484 = vst [vmem:[%s2670_s23 + $0x70] sm:$0xff] %v1452_v29  ;;  %v1389_v33 = vadd.f32 %v1779_v30, %v2664_v2 }
 0x28d   : > { %v1781_v34 = vpop.f32.mrf.mxu1 }
 0x28e   : > { %v1453_v35 = vadd.f32 %v1421_v31, %v1389_v33  ;;  %v1782_v36 = vadd.f32 %v1781_v34, %v1780_v32  ;;  %v1432_v34 = vld [vmem:[%s2457_s17 + $0xd0] sm:$0xff] }
 0x28f   : > { %v1783_v38 = vpop.f32.mrf.mxu1 }
 0x290   : > { %1485 = vst [vmem:[%s2670_s23 + $0x78] sm:$0xff] %v1453_v35  ;;  %v1390_v39 = vadd.f32 %v1782_v36, %v2664_v2 }
 0x291   : > { %v1784_v40 = vpop.f32.mrf.mxu1 }
 0x292   : > { %v1454_v41 = vadd.f32 %v1422_v37, %v1390_v39  ;;  %v1785_v42 = vadd.f32 %v1784_v40, %v1783_v38  ;;  %v1433_v40 = vld [vmem:[%s2457_s17 + $0xd8] sm:$0xff] }
 0x293   : > { %v1786_v44 = vpop.f32.mrf.mxu1 }
 0x294   : > { %1486 = vst [vmem:[%s2670_s23 + $0x80] sm:$0xff] %v1454_v41  ;;  %v1391_v45 = vadd.f32 %v1785_v42, %v2664_v2 }
 0x295   : > { %v1787_v46 = vpop.f32.mrf.mxu1 }
 0x296   : > { %v1455_v47 = vadd.f32 %v1423_v43, %v1391_v45  ;;  %v1788_v48 = vadd.f32 %v1787_v46, %v1786_v44  ;;  %v1434_v46 = vld [vmem:[%s2457_s17 + $0xe0] sm:$0xff] }
 0x297   : > { %v1789_v50 = vpop.f32.mrf.mxu1 }
 0x298   : > { %1487 = vst [vmem:[%s2670_s23 + $0x88] sm:$0xff] %v1455_v47  ;;  %v1392_v51 = vadd.f32 %v1788_v48, %v2664_v2 }
 0x299   : > { %v1790_v52 = vpop.f32.mrf.mxu1 }
 0x29a   : > { %v1456_v53 = vadd.f32 %v1424_v49, %v1392_v51  ;;  %v1791_v54 = vadd.f32 %v1790_v52, %v1789_v50  ;;  %v1435_v52 = vld [vmem:[%s2457_s17 + $0xe8] sm:$0xff] }
 0x29b   : > { %v1792_v56 = vpop.f32.mrf.mxu1 }
 0x29c   : > { %1488 = vst [vmem:[%s2670_s23 + $0x90] sm:$0xff] %v1456_v53  ;;  %v1393_v57 = vadd.f32 %v1791_v54, %v2664_v2 }
 0x29d   : > { %v1793_v58 = vpop.f32.mrf.mxu1 }
 0x29e   : > { %v1457_v59 = vadd.f32 %v1425_v55, %v1393_v57  ;;  %v1794_v60 = vadd.f32 %v1793_v58, %v1792_v56  ;;  %v1436_v58 = vld [vmem:[%s2457_s17 + $0xf0] sm:$0xff] }
 0x29f   : > { %v1795_v62 = vpop.f32.mrf.mxu1 }
 0x2a0   : > { %1489 = vst [vmem:[%s2670_s23 + $0x98] sm:$0xff] %v1457_v59  ;;  %v1394_v63 = vadd.f32 %v1794_v60, %v2664_v2 }
 0x2a1   : > { %v1796_v1 = vpop.f32.mrf.mxu1 }
 0x2a2   : > { %v1458_v0 = vadd.f32 %v1426_v61, %v1394_v63  ;;  %v1797_v3 = vadd.f32 %v1796_v1, %v1795_v62  ;;  %v1437_v1 = vld [vmem:[%s2457_s17 + $0xf8] sm:$0xff] }
 0x2a3   : > { %v1798_v4 = vpop.f32.mrf.mxu1 }
 0x2a4   : > { %1490 = vst [vmem:[%s2670_s23 + $0xa0] sm:$0xff] %v1458_v0  ;;  %v1395_v5 = vadd.f32 %v1797_v3, %v2664_v2 }
 0x2a5   : > { %v1799_v6 = vpop.f32.mrf.mxu1 }
 0x2a6   : > { %v1459_v7 = vadd.f32 %v1427_v24, %v1395_v5  ;;  %v1800_v8 = vadd.f32 %v1799_v6, %v1798_v4 }
 0x2a7   : > { %v1801_v10 = vpop.f32.mrf.mxu1 }
 0x2a8   : > { %1491 = vst [vmem:[%s2670_s23 + $0xa8] sm:$0xff] %v1459_v7  ;;  %v1396_v11 = vadd.f32 %v1800_v8, %v2664_v2 }
 0x2a9   : > { %v1802_v12 = vpop.f32.mrf.mxu1 }
 0x2aa   : > { %v1460_v13 = vadd.f32 %v1428_v9, %v1396_v11  ;;  %v1803_v14 = vadd.f32 %v1802_v12, %v1801_v10 }
 0x2ab   : > { %v1804_v16 = vpop.f32.mrf.mxu1 }
 0x2ac   : > { %1492 = vst [vmem:[%s2670_s23 + $0xb0] sm:$0xff] %v1460_v13  ;;  %v1397_v17 = vadd.f32 %v1803_v14, %v2664_v2 }
 0x2ad   : > { %v1805_v18 = vpop.f32.mrf.mxu1 }
 0x2ae   : > { %v1461_v19 = vadd.f32 %v1429_v15, %v1397_v17  ;;  %v1806_v20 = vadd.f32 %v1805_v18, %v1804_v16 }
 0x2af   : > { %v1807_v22 = vpop.f32.mrf.mxu1 }
 0x2b0   : > { %1493 = vst [vmem:[%s2670_s23 + $0xb8] sm:$0xff] %v1461_v19  ;;  %v1398_v23 = vadd.f32 %v1806_v20, %v2664_v2 }
 0x2b1   : > { %v1808_v25 = vpop.f32.mrf.mxu1 }
 0x2b2   : > { %v1462_v26 = vadd.f32 %v1430_v21, %v1398_v23  ;;  %v1809_v27 = vadd.f32 %v1808_v25, %v1807_v22 }
 0x2b3   : > { %v1810_v29 = vpop.f32.mrf.mxu1 }
 0x2b4   : > { %1494 = vst [vmem:[%s2670_s23 + $0xc0] sm:$0xff] %v1462_v26  ;;  %v1399_v30 = vadd.f32 %v1809_v27, %v2664_v2 }
 0x2b5   : > { %v1811_v31 = vpop.f32.mrf.mxu1 }
 0x2b6   : > { %v1463_v32 = vadd.f32 %v1431_v28, %v1399_v30  ;;  %v1812_v33 = vadd.f32 %v1811_v31, %v1810_v29 }
 0x2b7   : > { %v1813_v35 = vpop.f32.mrf.mxu1 }
 0x2b8   : > { %1495 = vst [vmem:[%s2670_s23 + $0xc8] sm:$0xff] %v1463_v32  ;;  %v1400_v36 = vadd.f32 %v1812_v33, %v2664_v2 }
 0x2b9   : > { %v1814_v37 = vpop.f32.mrf.mxu1 }
 0x2ba   : > { %v1464_v38 = vadd.f32 %v1432_v34, %v1400_v36  ;;  %v1815_v39 = vadd.f32 %v1814_v37, %v1813_v35 }
 0x2bb   : > { %v1816_v41 = vpop.f32.mrf.mxu1 }
 0x2bc   : > { %1496 = vst [vmem:[%s2670_s23 + $0xd0] sm:$0xff] %v1464_v38  ;;  %v1401_v42 = vadd.f32 %v1815_v39, %v2664_v2 }
 0x2bd   : > { %v1817_v43 = vpop.f32.mrf.mxu1 }
 0x2be   : > { %v1465_v44 = vadd.f32 %v1433_v40, %v1401_v42  ;;  %v1818_v45 = vadd.f32 %v1817_v43, %v1816_v41 }
 0x2bf   : > { %v1819_v47 = vpop.f32.mrf.mxu1 }
 0x2c0   : > { %1497 = vst [vmem:[%s2670_s23 + $0xd8] sm:$0xff] %v1465_v44  ;;  %v1402_v48 = vadd.f32 %v1818_v45, %v2664_v2 }
 0x2c1   : > { %v1820_v49 = vpop.f32.mrf.mxu1 }
 0x2c2   : > { %v1466_v50 = vadd.f32 %v1434_v46, %v1402_v48  ;;  %v1821_v51 = vadd.f32 %v1820_v49, %v1819_v47 }
 0x2c3   : > { %v1822_v53 = vpop.f32.mrf.mxu1 }
 0x2c4   : > { %1498 = vst [vmem:[%s2670_s23 + $0xe0] sm:$0xff] %v1466_v50  ;;  %v1403_v54 = vadd.f32 %v1821_v51, %v2664_v2 }
 0x2c5   : > { %v1823_v55 = vpop.f32.mrf.mxu1 }
 0x2c6   : > { %v1467_v56 = vadd.f32 %v1435_v52, %v1403_v54  ;;  %v1824_v57 = vadd.f32 %v1823_v55, %v1822_v53 }
 0x2c7   : > { %v1825_v59 = vpop.f32.mrf.mxu1 }
 0x2c8   : > { %1499 = vst [vmem:[%s2670_s23 + $0xe8] sm:$0xff] %v1467_v56  ;;  %v1404_v60 = vadd.f32 %v1824_v57, %v2664_v2 }
 0x2c9   : > { %v1826_v61 = vpop.f32.mrf.mxu1 }
 0x2ca   : > { %v1468_v62 = vadd.f32 %v1436_v58, %v1404_v60  ;;  %v1827_v63 = vadd.f32 %v1826_v61, %v1825_v59 }
 0x2cc   : > { %1500 = vst [vmem:[%s2670_s23 + $0xf0] sm:$0xff] %v1468_v62  ;;  %v1405_v0 = vadd.f32 %v1827_v63, %v2664_v2 }
 0x2ce   : > { %v1469_v3 = vadd.f32 %v1437_v1, %v1405_v0 }
 0x2d0   : > { %1501 = vst [vmem:[%s2670_s23 + $0xf8] sm:$0xff] %v1469_v3 }
 0x2d1   : > { %2103 = shalt.err (!%p2100_p1)
}
 0x2d2   : > { %s2104_s7 = scalar_lea.hbm %s2769_s12, 4096  ;;  %s2108_s17 = scalar_lea.hbm %s2877_s0, 8192 }
 0x2d3   : > { %p2105_p10 = scmp.ne.s32.totalorder %s2769_s12, %s2104_s7  ;;  %p2109_p8 = scmp.lt.s32.totalorder %s2769_s12, %s2877_s0 }
 0x2d4   : > { %p2110_p11 = scmp.lt.s32.totalorder %s2108_s17, %s2104_s7 }
 0x2d5   : > { %p2106_p6 = pnand %p2105_p10, %p2878_p7 }
 0x2d6   : > { %p2111_p4 = por %p2110_p11, %p2109_p8 }
 0x2d7   : > { %p2107_p2 = pneg %p2106_p6 }
 0x2d9   : > { %p2112_p12 = pnand %p2111_p4, %p2107_p2 }
 0x2db   : > { %2115 = shalt.err (!%p2112_p12)
}
 0x2dc   : > { %s2185_s30 = smov 128   ;;  %s2186_s19 = smov 8  }
 0x2dd   : > { %1842 = dma.vmem_to_hbm [thread:$0]  (%p2878_p7), %s2771_s29, 4096, %s2769_s12, %s1503_s21, %s2185_s30, %s2185_s30, %s2186_s19  }
 0x2de PF: > { %s2879_s20 = sld [smem:[#allocation19_spill]]  ;;  %p2882_p3 = scmp.ge.s32.totalorder %s2170_s27, 2 }
 0x2df   : > { %s2880_s8 = sld [smem:[#allocation21_spill]] }
 0x2e4   : > { %s1531_s11 = sand.u32 1, %s2879_s20  }
 0x2e5   : > { %p2881_p0 = scmp.ne.s32.totalorder %s2880_s8, 0  ;;  %s1532_s23 = scalar_lea.sflag [#allocation5], %s1531_s11 }
 0x2e7   : > { %p1862_p5 = pnand %p2882_p3, %p2881_p0 }
 0x2e9   : > { %p1863_p9 = pneg %p1862_p5 }
 0x2eb   : > { %2153 = dma.done.wait (%p1863_p9), %s1532_s23, 4096  }
 0x2ec   : > { %2155 = vsyncadd (%p1863_p9), %s1532_s23, 4294963200  ;;  %s2883_s27 = sld [smem:[#allocation22_spill]]  ;;  %s2886_s24 = smov %s2162_s25 }
 0x2ed   : > { %s2884_s18 = sld [smem:[#allocation20_spill]] }
 0x2ee   : > { %s2885_s26 = sld [smem:[#allocation23_spill]] }
 0x2f2   : > { %p24_p13 = scmp.ge.s32.totalorder %s2883_s27, 4  }
 0x2f3   : > { %s2887_s25 = smov %s2884_s18 }
 0x2f4   :  { %26 = sbr.rel (!%p24_p13) target bundleno = 13 (0xd), region = 125 }
 0x2f9   :  { %1537 = vsyncpa [#allocation4], 1 }
 0x2fa   :  { %1539 = vsyncpa [#allocation4 + $0x1], 1 }
 0x2fb   :  { %1540 = vsyncpa [#allocation7], 1 }
 0x2fc   :  { %1542 = vsyncpa [#allocation7 + $0x1], 1 }
 0x2fd   :  { %1543 = vsyncpa [#allocation10], 1 }
 0x2fe   :  { %1544 = vsyncpa [#allocation5], 1 }
 0x2ff   :  { %1546 = vsyncpa [#allocation5 + $0x1], 1 }

</bundles_post_ra>
